<compile_context>
chip_gen: v7x
topology: tpu7x:2x2x1
jax: 0.10.0
libtpu: 0.0.40
codegen_flags: <defaults>
</compile_context>

<pallas_src>
import functools

import numpy as np

import jax
import jax.numpy as jnp
from jax.experimental import pallas as pl
from jax.experimental.pallas import tpu as pltpu


# --------------------------------------------------------------------------- fused kernel
def _detector_kernel(x_ref, a1_ref, a2_ref, wn_ref, wh_ref, pp_ref, bb_ref, bias_ref,
                     out_ref):
    f32, bf16 = jnp.float32, jnp.bfloat16
    n1 = a1_ref.shape[1]          # conv1 output lanes  (Ho1*Wo1*C1)
    n2w = a2_ref.shape[1]         # conv2 / neck lanes  (Ho2*Wo2*C2)
    ow = wh_ref.shape[1]          # packed output width (128)

    # ---- backbone conv1: 3x3 stride-2 conv + bias + ReLU as one batched matmul ----
    x = x_ref[...].astype(bf16)                                             # [N, Cin*H*W]
    h1 = jnp.dot(x, a1_ref[...], preferred_element_type=f32)                # [N, n1]
    h1 = jnp.maximum(h1 + bias_ref[0:1, 0:n1], 0.0)

    # ---- backbone conv2 ----
    h2 = jnp.dot(h1.astype(bf16), a2_ref[...], preferred_element_type=f32)  # [N, n2w]
    h2 = jnp.maximum(h2 + bias_ref[1:2, 0:n2w], 0.0)

    # ---- neck: 1x1 conv on fea[-1] as a block-diagonal channel mix ----
    n2 = jnp.dot(h2.astype(bf16), wn_ref[...],
                 preferred_element_type=f32) + bias_ref[2:3, 0:n2w]          # [N, n2w] f32

    # ---- channel attention: y = AdaptiveAvgPool2d((1,1)); fea[-1] = y * fea[-1] ----
    # y is placed at lanes [Y_OFF, Y_OFF+C2) of a 128-wide row by the pooling matrix,
    # so it can be added straight into the packed output (f32 exact: 0 / 1/16 entries).
    y_full = jnp.dot(n2, pp_ref[...], preferred_element_type=f32)            # [N, ow]
    bcast = jnp.dot(y_full, bb_ref[...], preferred_element_type=f32)         # [N, n2w]
    scaled = n2 * bcast

    # ---- head: linear on flatten(C, H, W) of `scaled` (rows of wh_ref are permuted
    # to our (H, W, C) lane order, columns zero-padded to 128 for a lane-dense store) ----
    logits_full = jnp.dot(scaled.astype(bf16), wh_ref[...],
                          preferred_element_type=f32)                        # [N, ow]

    # single lane-dense packed store: lanes 0..HEAD_OUT-1 = logits, Y_OFF.. = y
    out_ref[...] = logits_full + bias_ref[3:4, 0:ow] + y_full


# --------------------------------------------------------------------------- host constants
def _conv_as_matmul(w, hin, win, stride, pad, input_hwc):
    """Dense matrix A such that  out_flat = in_flat @ A  equals Conv2d(w, stride, pad).
    in_flat is flattened in (C, H, W) order if input_hwc=False else (H, W, C);
    out_flat is flattened in (H, W, C) order.  Zero padding => simply absent entries."""
    cout, cin, k, _ = w.shape
    ho = (hin + 2 * pad - k) // stride + 1
    wo = (win + 2 * pad - k) // stride + 1
    a = np.zeros((cin * hin * win, ho * wo * cout), np.float32)
    for oh in range(ho):
        for ow_ in range(wo):
            for kh in range(k):
                hi = oh * stride + kh - pad
                if not (0 <= hi < hin):
                    continue
                for kw in range(k):
                    wi = ow_ * stride + kw - pad
                    if not (0 <= wi < win):
                        continue
                    for ci in range(cin):
                        in_idx = ((hi * win + wi) * cin + ci) if input_hwc \
                            else (ci * hin * win + hi * win + wi)
                        out_base = (oh * wo + ow_) * cout
                        a[in_idx, out_base:out_base + cout] = w[:, ci, kh, kw]
    return a, ho, wo


# --------------------------------------------------------------------------- pallas wrapper
def _full_spec(a):
    nd = a.ndim
    return pl.BlockSpec(a.shape, lambda i, _nd=nd: (0,) * _nd)   # whole array, loaded once


def detector_forward(x_flat, params):
    """x_flat: [N, Cin*H*W] f32 (pure reshape of the NCHW image)."""
    a1, a2, wn_bd, wh_pad, p_pad, bb_pad, biases = params
    n = x_flat.shape[0]
    out_w = wh_pad.shape[1]

    return pl.pallas_call(
        _detector_kernel,
        out_shape=jax.ShapeDtypeStruct((n, out_w), jnp.float32),
        grid=(1,),                                   # whole batch in one program (samples in sublanes)
        in_specs=[_full_spec(x_flat), _full_spec(a1), _full_spec(a2), _full_spec(wn_bd),
                  _full_spec(wh_pad), _full_spec(p_pad), _full_spec(bb_pad), _full_spec(biases)],
        out_specs=pl.BlockSpec((n, out_w), lambda i: (0, 0)),
        compiler_params=pltpu.CompilerParams(dimension_semantics=("arbitrary",)),
    )(x_flat, a1, a2, wn_bd, wh_pad, p_pad, bb_pad, biases)


@functools.partial(jax.jit, static_argnames=("head_out", "c_att", "y_off"))
def detector_apply(img, params, *, head_out, c_att, y_off):
    """NCHW image -> {'output', 'ca_y'}; everything beyond a reshape runs in one Pallas kernel."""
    n = img.shape[0]
    x_flat = img.reshape(n, -1)                      # contiguous NCHW flatten: no transpose/pad/cast
    packed = detector_forward(x_flat, params)        # [N, 128] f32 (lane-dense packed outputs)
    logits = packed[:, :head_out]
    y = packed[:, y_off:y_off + c_att]
    return {
        'output': logits,                            # heads(fea, y) eval-path output
        'ca_y': y[:, :, None, None],                 # [N, C, 1, 1] like AdaptiveAvgPool2d
    }


# --------------------------------------------------------------------------- detector
class PallasDetector:
    """Synthetic Detector (eval mode): backbone -> (no aggregator) -> neck -> CA -> heads,
    fused into a single single-program Pallas TPU kernel (6 batched matmuls total)."""

    C_IN = 3
    C1, C2 = 8, 16        # backbone stage widths
    HEAD_OUT = 12
    OUT_W = 128           # packed lane-dense output row width
    Y_OFF = 16            # lane offset of the channel-attention vector in the packed row

    def __init__(self, key, h=16, w=16):
        assert self.HEAD_OUT <= self.Y_OFF and self.Y_OFF + self.C2 <= self.OUT_W
        ks = jax.random.split(key, 4)
        s = 0.1

        # ---- raw layer weights (PyTorch layouts) ----
        wc1 = np.asarray(s * jax.random.normal(ks[0], (self.C1, self.C_IN, 3, 3), jnp.float32))
        wc2 = np.asarray(s * jax.random.normal(ks[1], (self.C2, self.C1, 3, 3), jnp.float32))
        wn = np.asarray(s * jax.random.normal(ks[2], (self.C2, self.C2), jnp.float32))   # 1x1 neck conv
        b1 = np.zeros(self.C1, np.float32)
        b2 = np.zeros(self.C2, np.float32)
        bn = np.zeros(self.C2, np.float32)

        # ---- backbone convs as dense matmul operators (NCHW perm folded into A1) ----
        # TODO(synk): dense conv-as-matrix only scales to toy images; real sizes need tiled windows.
        a1, ho1, wo1 = _conv_as_matmul(wc1, h, w, 2, 1, input_hwc=False)   # [Cin*H*W, ho1*wo1*C1]
        a2, ho2, wo2 = _conv_as_matmul(wc2, ho1, wo1, 2, 1, input_hwc=True)
        s2 = ho2 * wo2                                                      # fea[-1] spatial size (16)
        self.c_att = self.C2

        # ---- neck 1x1 conv as block-diagonal channel mix in (spatial, channel) lane layout ----
        # TODO(synk): the real neck (e.g. FPN) projects every pyramid level; the stand-in head
        #             consumes only fea[-1], so the level-0 projection is elided from the kernel.
        wn_bd = np.zeros((s2 * self.C2, s2 * self.C2), np.float32)
        for sp in range(s2):
            wn_bd[sp * self.C2:(sp + 1) * self.C2, sp * self.C2:(sp + 1) * self.C2] = wn.T

        # ---- head: linear on flatten(C, H, W); rows permuted to our (H, W, C) lane order,
        #      columns zero-padded to 128 so the packed output store is lane-dense ----
        # TODO(synk): real heads are config-dependent (LaneATT / CondLane ...); a linear head stands in.
        wh_t = np.asarray(s * jax.random.normal(ks[3], (self.HEAD_OUT, self.C2 * s2), jnp.float32))
        bh = np.zeros(self.HEAD_OUT, np.float32)
        wh_pad = np.zeros((s2 * self.C2, self.OUT_W), np.float32)
        for sp in range(s2):
            for c in range(self.C2):
                wh_pad[sp * self.C2 + c, :self.HEAD_OUT] = wh_t[:, c * s2 + sp]

        # ---- channel attention: spatial-mean pooling & lane-broadcast matrices (f32 exact) ----
        p_pad = np.zeros((s2 * self.C2, self.OUT_W), np.float32)    # n2 @ p_pad -> y at lanes Y_OFF..
        bb_pad = np.zeros((self.OUT_W, s2 * self.C2), np.float32)   # y_full @ bb_pad -> per-lane scale
        for sp in range(s2):
            for c in range(self.C2):
                p_pad[sp * self.C2 + c, self.Y_OFF + c] = 1.0 / s2
                bb_pad[self.Y_OFF + c, sp * self.C2 + c] = 1.0

        # ---- all per-lane biases packed into ONE array (single DMA descriptor) ----
        n1l, n2l = a1.shape[1], a2.shape[1]
        biases = np.zeros((4, max(n1l, n2l, self.OUT_W)), np.float32)
        biases[0, :n1l] = np.tile(b1, ho1 * wo1)              # conv1 bias, per output lane
        biases[1, :n2l] = np.tile(b2, s2)                     # conv2 bias
        biases[2, :n2l] = np.tile(bn, s2)                     # neck bias
        biases[3, :self.HEAD_OUT] = bh                        # head bias (packed-output lanes 0..11)

        bf = jnp.bfloat16
        self.params = (
            jnp.asarray(a1, dtype=bf), jnp.asarray(a2, dtype=bf), jnp.asarray(wn_bd, dtype=bf),
            jnp.asarray(wh_pad, dtype=bf),
            jnp.asarray(p_pad), jnp.asarray(bb_pad),          # f32: CA pooling/broadcast stay exact
            jnp.asarray(biases),
        )

    def __call__(self, batch):
        return detector_apply(batch['img'], self.params,
                              head_out=self.HEAD_OUT, c_att=self.c_att, y_off=self.Y_OFF)


# --------------------------------------------------------------------------- main
if __name__ == "__main__":
    key = jax.random.PRNGKey(0)
    k_img, k_par = jax.random.split(key)
    img = jax.random.normal(k_img, (2, 3, 16, 16), jnp.float32)   # batch['img'], NCHW

    detector = PallasDetector(k_par)
    out = detector({'img': img})
    jax.block_until_ready(out)

    assert out['output'].shape == (2, 12)
    assert out['ca_y'].shape == (2, 16, 1, 1)
    assert bool(jnp.all(jnp.isfinite(out['output'])))
    assert bool(jnp.all(jnp.isfinite(out['ca_y'])))
    print("KERNEL_OK")
</pallas_src>

<mosaic_0001>
module attributes {stable_mosaic.version = 11 : i64} {
  func.func @_detector_kernel(%arg0: i32, %arg1: memref<2x768xf32, #tpu.memory_space<vmem>>, %arg2: memref<768x512xbf16, #tpu.memory_space<vmem>>, %arg3: memref<512x256xbf16, #tpu.memory_space<vmem>>, %arg4: memref<256x256xbf16, #tpu.memory_space<vmem>>, %arg5: memref<256x128xbf16, #tpu.memory_space<vmem>>, %arg6: memref<256x128xf32, #tpu.memory_space<vmem>>, %arg7: memref<128x256xf32, #tpu.memory_space<vmem>>, %arg8: memref<4x512xf32, #tpu.memory_space<vmem>>, %arg9: memref<2x128xf32, #tpu.memory_space<vmem>>) attributes {dimension_semantics = [#tpu.dimension_semantics<arbitrary>], iteration_bounds = array<i64: 1>, scalar_prefetch = 0 : i64, scratch_operands = 0 : i64, tpu.core_type = #tpu.core_type<tc>, window_params = [{pipeline_mode = #tpu.pipeline_mode<synchronous>, transform_indices = @transform_0, window_bounds = array<i64: 2, 768>}, {pipeline_mode = #tpu.pipeline_mode<synchronous>, transform_indices = @transform_1, window_bounds = array<i64: 768, 512>}, {pipeline_mode = #tpu.pipeline_mode<synchronous>, transform_indices = @transform_2, window_bounds = array<i64: 512, 256>}, {pipeline_mode = #tpu.pipeline_mode<synchronous>, transform_indices = @transform_3, window_bounds = array<i64: 256, 256>}, {pipeline_mode = #tpu.pipeline_mode<synchronous>, transform_indices = @transform_4, window_bounds = array<i64: 256, 128>}, {pipeline_mode = #tpu.pipeline_mode<synchronous>, transform_indices = @transform_5, window_bounds = array<i64: 256, 128>}, {pipeline_mode = #tpu.pipeline_mode<synchronous>, transform_indices = @transform_6, window_bounds = array<i64: 128, 256>}, {pipeline_mode = #tpu.pipeline_mode<synchronous>, transform_indices = @transform_7, window_bounds = array<i64: 4, 512>}, {pipeline_mode = #tpu.pipeline_mode<synchronous>, transform_indices = @transform_8, window_bounds = array<i64: 2, 128>}]} {
    %c0 = arith.constant 0 : index
    %c0_0 = arith.constant 0 : index
    %0 = vector.load %arg1[%c0, %c0_0] : memref<2x768xf32, #tpu.memory_space<vmem>>, vector<2x768xf32>
    %1 = arith.truncf %0 : vector<2x768xf32> to vector<2x768xbf16>
    %c0_1 = arith.constant 0 : index
    %c0_2 = arith.constant 0 : index
    %2 = vector.load %arg2[%c0_1, %c0_2] : memref<768x512xbf16, #tpu.memory_space<vmem>>, vector<768x512xbf16>
    %cst = arith.constant dense<0.000000e+00> : vector<2x512xf32>
    %3 = tpu.matmul %1, %2, %cst {dimension_numbers = #tpu.dot_dimension_numbers<[1], [0], [0], [1], [0, 0, 1, 1], [], []>} : vector<2x768xbf16>, vector<768x512xbf16>, vector<2x512xf32> -> vector<2x512xf32>
    %c0_3 = arith.constant 0 : index
    %c0_4 = arith.constant 0 : index
    %4 = vector.load %arg8[%c0_3, %c0_4] : memref<4x512xf32, #tpu.memory_space<vmem>>, vector<1x512xf32>
    %5 = vector.broadcast %4 : vector<1x512xf32> to vector<2x512xf32>
    %6 = arith.addf %3, %5 : vector<2x512xf32>
    %cst_5 = arith.constant 0.000000e+00 : f32
    %7 = vector.broadcast %cst_5 : f32 to vector<2x512xf32>
    %8 = arith.maximumf %6, %7 : vector<2x512xf32>
    %9 = arith.truncf %8 : vector<2x512xf32> to vector<2x512xbf16>
    %c0_6 = arith.constant 0 : index
    %c0_7 = arith.constant 0 : index
    %10 = vector.load %arg3[%c0_6, %c0_7] : memref<512x256xbf16, #tpu.memory_space<vmem>>, vector<512x256xbf16>
    %cst_8 = arith.constant dense<0.000000e+00> : vector<2x256xf32>
    %11 = tpu.matmul %9, %10, %cst_8 {dimension_numbers = #tpu.dot_dimension_numbers<[1], [0], [0], [1], [0, 0, 1, 1], [], []>} : vector<2x512xbf16>, vector<512x256xbf16>, vector<2x256xf32> -> vector<2x256xf32>
    %c1 = arith.constant 1 : index
    %c0_9 = arith.constant 0 : index
    %12 = vector.load %arg8[%c1, %c0_9] : memref<4x512xf32, #tpu.memory_space<vmem>>, vector<1x256xf32>
    %13 = vector.broadcast %12 : vector<1x256xf32> to vector<2x256xf32>
    %14 = arith.addf %11, %13 : vector<2x256xf32>
    %cst_10 = arith.constant 0.000000e+00 : f32
    %15 = vector.broadcast %cst_10 : f32 to vector<2x256xf32>
    %16 = arith.maximumf %14, %15 : vector<2x256xf32>
    %17 = arith.truncf %16 : vector<2x256xf32> to vector<2x256xbf16>
    %c0_11 = arith.constant 0 : index
    %c0_12 = arith.constant 0 : index
    %18 = vector.load %arg4[%c0_11, %c0_12] : memref<256x256xbf16, #tpu.memory_space<vmem>>, vector<256x256xbf16>
    %cst_13 = arith.constant dense<0.000000e+00> : vector<2x256xf32>
    %19 = tpu.matmul %17, %18, %cst_13 {dimension_numbers = #tpu.dot_dimension_numbers<[1], [0], [0], [1], [0, 0, 1, 1], [], []>} : vector<2x256xbf16>, vector<256x256xbf16>, vector<2x256xf32> -> vector<2x256xf32>
    %c2 = arith.constant 2 : index
    %c0_14 = arith.constant 0 : index
    %20 = vector.load %arg8[%c2, %c0_14] : memref<4x512xf32, #tpu.memory_space<vmem>>, vector<1x256xf32>
    %21 = vector.broadcast %20 : vector<1x256xf32> to vector<2x256xf32>
    %22 = arith.addf %19, %21 : vector<2x256xf32>
    %c0_15 = arith.constant 0 : index
    %c0_16 = arith.constant 0 : index
    %23 = vector.load %arg6[%c0_15, %c0_16] : memref<256x128xf32, #tpu.memory_space<vmem>>, vector<256x128xf32>
    %cst_17 = arith.constant dense<0.000000e+00> : vector<2x128xf32>
    %24 = tpu.matmul %22, %23, %cst_17 {dimension_numbers = #tpu.dot_dimension_numbers<[1], [0], [0], [1], [0, 0, 1, 1], [], []>} : vector<2x256xf32>, vector<256x128xf32>, vector<2x128xf32> -> vector<2x128xf32>
    %c0_18 = arith.constant 0 : index
    %c0_19 = arith.constant 0 : index
    %25 = vector.load %arg7[%c0_18, %c0_19] : memref<128x256xf32, #tpu.memory_space<vmem>>, vector<128x256xf32>
    %cst_20 = arith.constant dense<0.000000e+00> : vector<2x256xf32>
    %26 = tpu.matmul %24, %25, %cst_20 {dimension_numbers = #tpu.dot_dimension_numbers<[1], [0], [0], [1], [0, 0, 1, 1], [], []>} : vector<2x128xf32>, vector<128x256xf32>, vector<2x256xf32> -> vector<2x256xf32>
    %27 = arith.mulf %22, %26 : vector<2x256xf32>
    %28 = arith.truncf %27 : vector<2x256xf32> to vector<2x256xbf16>
    %c0_21 = arith.constant 0 : index
    %c0_22 = arith.constant 0 : index
    %29 = vector.load %arg5[%c0_21, %c0_22] : memref<256x128xbf16, #tpu.memory_space<vmem>>, vector<256x128xbf16>
    %cst_23 = arith.constant dense<0.000000e+00> : vector<2x128xf32>
    %30 = tpu.matmul %28, %29, %cst_23 {dimension_numbers = #tpu.dot_dimension_numbers<[1], [0], [0], [1], [0, 0, 1, 1], [], []>} : vector<2x256xbf16>, vector<256x128xbf16>, vector<2x128xf32> -> vector<2x128xf32>
    %c3 = arith.constant 3 : index
    %c0_24 = arith.constant 0 : index
    %31 = vector.load %arg8[%c3, %c0_24] : memref<4x512xf32, #tpu.memory_space<vmem>>, vector<1x128xf32>
    %32 = vector.broadcast %31 : vector<1x128xf32> to vector<2x128xf32>
    %33 = arith.addf %30, %32 : vector<2x128xf32>
    %34 = arith.addf %33, %24 : vector<2x128xf32>
    %c0_25 = arith.constant 0 : index
    %c0_26 = arith.constant 0 : index
    %35 = vector.load %arg9[%c0_25, %c0_26] : memref<2x128xf32, #tpu.memory_space<vmem>>, vector<2x128xf32>
    tpu.vector_store %arg9[%c0_25, %c0_26], %34 {strides = array<i32>} : memref<2x128xf32, #tpu.memory_space<vmem>>, vector<2x128xf32>,
    return
  }
  func.func @transform_0(%arg0: i32) -> (i32, i32) {
    %c0_i32 = arith.constant 0 : i32
    %c0_i32_0 = arith.constant 0 : i32
    %c0_i32_1 = arith.constant 0 : i32
    return %c0_i32, %c0_i32_0 : i32, i32
  }
  func.func @transform_1(%arg0: i32) -> (i32, i32) {
    %c0_i32 = arith.constant 0 : i32
    %c0_i32_0 = arith.constant 0 : i32
    %c0_i32_1 = arith.constant 0 : i32
    return %c0_i32, %c0_i32_0 : i32, i32
  }
  func.func @transform_2(%arg0: i32) -> (i32, i32) {
    %c0_i32 = arith.constant 0 : i32
    %c0_i32_0 = arith.constant 0 : i32
    %c0_i32_1 = arith.constant 0 : i32
    return %c0_i32, %c0_i32_0 : i32, i32
  }
  func.func @transform_3(%arg0: i32) -> (i32, i32) {
    %c0_i32 = arith.constant 0 : i32
    %c0_i32_0 = arith.constant 0 : i32
    %c0_i32_1 = arith.constant 0 : i32
    return %c0_i32, %c0_i32_0 : i32, i32
  }
  func.func @transform_4(%arg0: i32) -> (i32, i32) {
    %c0_i32 = arith.constant 0 : i32
    %c0_i32_0 = arith.constant 0 : i32
    %c0_i32_1 = arith.constant 0 : i32
    return %c0_i32, %c0_i32_0 : i32, i32
  }
  func.func @transform_5(%arg0: i32) -> (i32, i32) {
    %c0_i32 = arith.constant 0 : i32
    %c0_i32_0 = arith.constant 0 : i32
    %c0_i32_1 = arith.constant 0 : i32
    return %c0_i32, %c0_i32_0 : i32, i32
  }
  func.func @transform_6(%arg0: i32) -> (i32, i32) {
    %c0_i32 = arith.constant 0 : i32
    %c0_i32_0 = arith.constant 0 : i32
    %c0_i32_1 = arith.constant 0 : i32
    return %c0_i32, %c0_i32_0 : i32, i32
  }
  func.func @transform_7(%arg0: i32) -> (i32, i32) {
    %c0_i32 = arith.constant 0 : i32
    %c0_i32_0 = arith.constant 0 : i32
    %c0_i32_1 = arith.constant 0 : i32
    return %c0_i32, %c0_i32_0 : i32, i32
  }
  func.func @transform_8(%arg0: i32) -> (i32, i32) {
    %c0_i32 = arith.constant 0 : i32
    %c0_i32_0 = arith.constant 0 : i32
    %c0_i32_1 = arith.constant 0 : i32
    return %c0_i32, %c0_i32_0 : i32, i32
  }
}

</mosaic_0001>

<bundles_post_ra>
// kernel: detector_apply.1
= control target key start
LH: loop header
LB: loop body
LE: loop exit
PB: predicated region body
PF: predicated region fallthrough
CT: control target
= control target key end

     0   :  { %13 = vsyncpa [#allocation3], 0  ;;  %s3973_s0 = inlined_call_operand.vmem [shape: f32[2,768], index: 0, kind: input, shape index: {}]   ;;  %s3974_s1 = inlined_call_operand.hbm [shape: bf16[768,512], index: 1, kind: input, shape index: {}]   ;;  %s3975_s2 = inlined_call_operand.hbm [shape: bf16[512,256], index: 2, kind: input, shape index: {}]   ;;  %s3976_s3 = inlined_call_operand.hbm [shape: bf16[256,256], index: 3, kind: input, shape index: {}]   ;;  %s3977_s4 = inlined_call_operand.hbm [shape: bf16[256,128], index: 4, kind: input, shape index: {}]   ;;  %s3978_s5 = inlined_call_operand.hbm [shape: f32[256,128], index: 5, kind: input, shape index: {}]   ;;  %s3979_s6 = inlined_call_operand.hbm [shape: f32[128,256], index: 6, kind: input, shape index: {}]   ;;  %s3980_s7 = inlined_call_operand.vmem [shape: f32[4,512], index: 7, kind: input, shape index: {}]   ;;  %s3981_s8 = inlined_call_operand.vmem [shape: f32[2,128], index: 8, kind: output, shape index: {}]  }
   0x1   :  { %14 = vsyncpa [#allocation5], 0 }
   0x2   :  { %15 = vsyncpa [#allocation8], 0 }
   0x3   :  { %16 = vsyncpa [#allocation11], 0  ;;  %s3760_s27 = smov [#allocation4]   ;;  %s3620_s9 = scalar_lea.hbm %s3975_s2, 8192 }
   0x4   :  { %s36_s28 = sshll.u32 %s3760_s27, 4  ;;  %p3621_p0 = scmp.ne.s32.totalorder %s3975_s2, %s3620_s9  ;;  %s37_s28 = int_to_ptr.vmem [resolvable:$true] %s36_s28 }
   0x5   :  { %p3624_p1 = scmp.lt.u32.totalorder %s3620_s9, %s3975_s2 }
   0x7   :  { %p3626_p2 = pnand %p3624_p1, %p3621_p0 }
   0x9   :  { %3629 = shalt.err (!%p3626_p2)
}
   0xa   :  { %s3630_s14 = scalar_lea.vmem %s37_s28, 8192  ;;  %p3635_p4 = scmp.lt.s32.totalorder %s37_s28, %s37_s28 }
   0xb   :  { %p3631_p3 = scmp.ne.s32.totalorder %s37_s28, %s3630_s14  ;;  %p3636_p5 = scmp.lt.s32.totalorder %s3630_s14, %s3630_s14 }
   0xd   :  { %p3637_p6 = por %p3636_p5, %p3635_p4 }
   0xf   :  { %p3638_p7 = pnand %p3637_p6, %p3631_p3 }
  0x11   :  { %3641 = shalt.err (!%p3638_p7)
}
  0x12   :  { %s3761_s15 = smov 128   ;;  %s3762_s16 = smov 8  }
  0x13   :  { %42 = dma.hbm_to_vmem [thread:$0]  %s3975_s2, 8192, %s37_s28, [#allocation5], %s3761_s15, %s3761_s15, %s3762_s16  }
  0x14   :  { %s3763_s19 = smov [#allocation7]   ;;  %s3642_s23 = scalar_lea.hbm %s3977_s4, 2048 }
  0x15   :  { %s60_s20 = sshll.u32 %s3763_s19, 4  ;;  %p3643_p8 = scmp.ne.s32.totalorder %s3977_s4, %s3642_s23  ;;  %s61_s20 = int_to_ptr.vmem [resolvable:$true] %s60_s20 }
  0x16   :  { %p3646_p9 = scmp.lt.u32.totalorder %s3642_s23, %s3977_s4 }
  0x18   :  { %p3648_p10 = pnand %p3646_p9, %p3643_p8 }
  0x1a   :  { %3651 = shalt.err (!%p3648_p10)
}
  0x1b   :  { %s3652_s29 = scalar_lea.vmem %s61_s20, 2048  ;;  %p3657_p12 = scmp.lt.s32.totalorder %s61_s20, %s61_s20 }
  0x1c   :  { %p3653_p11 = scmp.ne.s32.totalorder %s61_s20, %s3652_s29  ;;  %p3658_p13 = scmp.lt.s32.totalorder %s3652_s29, %s3652_s29 }
  0x1e   :  { %p3659_p0 = por %p3658_p13, %p3657_p12 }
  0x20   :  { %p3660_p1 = pnand %p3659_p0, %p3653_p11 }
  0x22   :  { %3663 = shalt.err (!%p3660_p1)
}
  0x23   :  { %s3764_s2 = smov 64   ;;  %s3765_s28 = smov 4  }
  0x24   :  { %66 = dma.hbm_to_vmem [thread:$0]  %s3977_s4, 2048, %s61_s20, [#allocation8], %s3764_s2, %s3764_s2, %s3765_s28  }
  0x25   :  { %s3766_s10 = smov [#allocation2]   ;;  %s3664_s14 = scalar_lea.hbm %s3974_s1, 24576 }
  0x26   :  { %s24_s11 = sshll.u32 %s3766_s10, 4  ;;  %p3665_p2 = scmp.ne.s32.totalorder %s3974_s1, %s3664_s14  ;;  %s25_s11 = int_to_ptr.vmem [resolvable:$true] %s24_s11 }
  0x27   :  { %p3668_p3 = scmp.lt.u32.totalorder %s3664_s14, %s3974_s1 }
  0x29   :  { %p3670_p4 = pnand %p3668_p3, %p3665_p2 }
  0x2b   :  { %3673 = shalt.err (!%p3670_p4)
}
  0x2c   :  { %s3674_s22 = scalar_lea.vmem %s25_s11, 24576  ;;  %p3679_p6 = scmp.lt.s32.totalorder %s25_s11, %s25_s11 }
  0x2d   :  { %p3675_p5 = scmp.ne.s32.totalorder %s25_s11, %s3674_s22  ;;  %p3680_p7 = scmp.lt.s32.totalorder %s3674_s22, %s3674_s22 }
  0x2f   :  { %p3681_p8 = por %p3680_p7, %p3679_p6 }
  0x31   :  { %p3682_p9 = pnand %p3681_p8, %p3675_p5 }
  0x33   :  { %3685 = shalt.err (!%p3682_p9)
}
  0x34   :  { %s3767_s4 = smov 256   ;;  %s3768_s20 = smov 16  }
  0x35   :  { %30 = dma.hbm_to_vmem [thread:$0]  %s3974_s1, 24576, %s25_s11, [#allocation3], %s3767_s4, %s3767_s4, %s3768_s20  }
  0x36   :  { %s3769_s25 = smov [#allocation6]   ;;  %s3770_s27 = smov [#allocation9]  }
  0x37   :  { %s48_s26 = sshll.u32 %s3769_s25, 4  ;;  %s72_s29 = sshll.u32 %s3770_s27, 4  ;;  %s49_s26 = int_to_ptr.vmem [resolvable:$true] %s48_s26  ;;  %s73_s29 = int_to_ptr.vmem [resolvable:$true] %s72_s29 }
  0x38   :  { %s3686_s30 = scalar_lea.hbm %s3976_s3, 4096 }
  0x39   :  { %p3687_p10 = scmp.ne.s32.totalorder %s3976_s3, %s3686_s30  ;;  %p3690_p11 = scmp.lt.u32.totalorder %s3686_s30, %s3976_s3 }
  0x3b   :  { %p3692_p12 = pnand %p3690_p11, %p3687_p10 }
  0x3d   :  { %3695 = shalt.err (!%p3692_p12)
}
  0x3e   :  { %s3696_s1 = scalar_lea.vmem %s49_s26, 4096  ;;  %p3701_p0 = scmp.lt.s32.totalorder %s49_s26, %s49_s26 }
  0x3f   :  { %p3697_p13 = scmp.ne.s32.totalorder %s49_s26, %s3696_s1  ;;  %p3702_p1 = scmp.lt.s32.totalorder %s3696_s1, %s3696_s1 }
  0x41   :  { %p3703_p2 = por %p3702_p1, %p3701_p0 }
  0x43   :  { %p3704_p3 = pnand %p3703_p2, %p3697_p13 }
  0x45   :  { %3707 = shalt.err (!%p3704_p3)
}
  0x46   :  { %54 = dma.hbm_to_vmem [thread:$0]  %s3976_s3, 4096, %s49_s26, [#allocation5], %s3761_s15, %s3761_s15, %s3762_s16  }
  0x47   :  { %s3708_s19 = scalar_lea.hbm %s3978_s5, 4096 }
  0x48   :  { %p3709_p4 = scmp.ne.s32.totalorder %s3978_s5, %s3708_s19  ;;  %p3712_p5 = scmp.lt.u32.totalorder %s3708_s19, %s3978_s5 }
  0x4a   :  { %p3714_p6 = pnand %p3712_p5, %p3709_p4 }
  0x4c   :  { %3717 = shalt.err (!%p3714_p6)
}
  0x4d   :  { %s3718_s25 = scalar_lea.vmem %s73_s29, 4096  ;;  %p3723_p8 = scmp.lt.s32.totalorder %s73_s29, %s73_s29 }
  0x4e   :  { %p3719_p7 = scmp.ne.s32.totalorder %s73_s29, %s3718_s25  ;;  %p3724_p9 = scmp.lt.s32.totalorder %s3718_s25, %s3718_s25 }
  0x50   :  { %p3725_p10 = por %p3724_p9, %p3723_p8 }
  0x52   :  { %p3726_p11 = pnand %p3725_p10, %p3719_p7 }
  0x54   :  { %3729 = shalt.err (!%p3726_p11)
}
  0x55   :  { %78 = dma.hbm_to_vmem [thread:$0]  %s3978_s5, 4096, %s73_s29, [#allocation8], %s3761_s15, %s3761_s15, %s3762_s16  }
  0x56   :  { %s3771_s27 = smov [#allocation10]   ;;  %s3730_s9 = scalar_lea.hbm %s3979_s6, 4096 }
  0x57   :  { %s84_s2 = sshll.u32 %s3771_s27, 4  ;;  %p3731_p12 = scmp.ne.s32.totalorder %s3979_s6, %s3730_s9  ;;  %s85_s2 = int_to_ptr.vmem [resolvable:$true] %s84_s2 }
  0x58   :  { %p3734_p13 = scmp.lt.u32.totalorder %s3730_s9, %s3979_s6 }
  0x5a   :  { %p3736_p0 = pnand %p3734_p13, %p3731_p12 }
  0x5c   :  { %3739 = shalt.err (!%p3736_p0)
}
  0x5d   :  { %s3740_s11 = scalar_lea.vmem %s85_s2, 4096  ;;  %p3745_p2 = scmp.lt.s32.totalorder %s85_s2, %s85_s2 }
  0x5e   :  { %p3741_p1 = scmp.ne.s32.totalorder %s85_s2, %s3740_s11  ;;  %p3746_p3 = scmp.lt.s32.totalorder %s3740_s11, %s3740_s11 }
  0x60   :  { %p3747_p4 = por %p3746_p3, %p3745_p2 }
  0x62   :  { %p3748_p5 = pnand %p3747_p4, %p3741_p1 }
  0x64   :  { %3751 = shalt.err (!%p3748_p5)
}
  0x65   :  { %90 = dma.hbm_to_vmem [thread:$0]  %s3979_s6, 4096, %s85_s2, [#allocation11], %s3767_s4, %s3767_s4, %s3768_s20  }
  0x66   :  { %3752 = dma.done.wait [#allocation3], 24576  }
  0x67   :  { %3753 = vsyncadd [#allocation3], 4294942720 }
  0x68   :  { %3754 = dma.done.wait [#allocation5], 12288  }
  0x69   :  { %3755 = vsyncadd [#allocation5], 4294955008 }
  0x6a   :  { %3756 = dma.done.wait [#allocation8], 6144  }
  0x6b   :  { %3757 = vsyncadd [#allocation8], 4294961152 }
  0x6c   :  { %3758 = dma.done.wait [#allocation11], 4096  }
  0x6d   :  { %3759 = vsyncadd [#allocation11], 4294963200  ;;  %v3171_v0 = vld [vmem:[#allocation2 + $0x4] ss:$16 sps:$4 sm:$0xff]   ;;  %v3173_v1 = vld [vmem:[#allocation2 + $0xc] ss:$16 sps:$4 sm:$0xff]   ;;  %v120_v38 = vlaneseq }
  0x6e   :  { %1327 = vmatprep.subr.bf16.mxu0 %v3171_v0  ;;  %v3175_v2 = vld [vmem:[#allocation2] ss:$16 sps:$4 sm:$0xff]   ;;  %v3176_v3 = vld [vmem:[#allocation2 + $0x8] ss:$16 sps:$4 sm:$0xff]   ;;  %1450 = vmatprep.subr.bf16.mxu1 %v3173_v1  ;;  %v3177_v4 = vld [vmem:[#allocation2 + $0x24] ss:$16 sps:$4 sm:$0xff]  }
  0x6f   :  { %1328 = vmatpush1.bf16.msra.mxu0 %v3175_v2  ;;  %1451 = vmatpush1.bf16.msra.mxu1 %v3176_v3  ;;  %v3179_v5 = vld [vmem:[#allocation2 + $0x2c] ss:$16 sps:$4 sm:$0xff]   ;;  %v3181_v6 = vld [vmem:[#allocation2 + $0x20] ss:$16 sps:$4 sm:$0xff]   ;;  %v3182_v7 = vld [vmem:[#allocation2 + $0x28] ss:$16 sps:$4 sm:$0xff]  }
  0x70   :  { %1329 = vmatprep.subr.bf16.mxu0 %v3177_v4  ;;  %1452 = vmatprep.subr.bf16.mxu1 %v3179_v5  ;;  %v3183_v8 = vld [vmem:[#allocation2 + $0x44] ss:$16 sps:$4 sm:$0xff]   ;;  %v3185_v9 = vld [vmem:[#allocation2 + $0x4c] ss:$16 sps:$4 sm:$0xff]   ;;  %v3187_v10 = vld [vmem:[#allocation2 + $0x40] ss:$16 sps:$4 sm:$0xff]  }
  0x71   :  { %v3188_v11 = vld [vmem:[#allocation2 + $0x48] ss:$16 sps:$4 sm:$0xff]   ;;  %v3189_v12 = vld [vmem:[#allocation2 + $0x64] ss:$16 sps:$4 sm:$0xff]   ;;  %v3191_v13 = vld [vmem:[#allocation2 + $0x6c] ss:$16 sps:$4 sm:$0xff]  }
  0x72   :  { %v3193_v14 = vld [vmem:[#allocation2 + $0x60] ss:$16 sps:$4 sm:$0xff]   ;;  %v3194_v15 = vld [vmem:[#allocation2 + $0x68] ss:$16 sps:$4 sm:$0xff]   ;;  %v3195_v16 = vld [vmem:[#allocation2 + $0x84] ss:$16 sps:$4 sm:$0xff]  }
  0x73   :  { %1330 = vmatpush1.bf16.msra.mxu0 %v3181_v6  ;;  %1453 = vmatpush1.bf16.msra.mxu1 %v3182_v7  ;;  %v3197_v17 = vld [vmem:[#allocation2 + $0x8c] ss:$16 sps:$4 sm:$0xff]   ;;  %v3199_v18 = vld [vmem:[#allocation2 + $0x80] ss:$16 sps:$4 sm:$0xff]   ;;  %v3200_v19 = vld [vmem:[#allocation2 + $0x88] ss:$16 sps:$4 sm:$0xff]  }
  0x74   :  { %1331 = vmatprep.subr.bf16.mxu0 %v3183_v8  ;;  %1454 = vmatprep.subr.bf16.mxu1 %v3185_v9  ;;  %v3201_v20 = vld [vmem:[#allocation2 + $0xa4] ss:$16 sps:$4 sm:$0xff]   ;;  %v3203_v21 = vld [vmem:[#allocation2 + $0xac] ss:$16 sps:$4 sm:$0xff]   ;;  %v3205_v22 = vld [vmem:[#allocation2 + $0xa0] ss:$16 sps:$4 sm:$0xff]  }
  0x75   :  { %v3206_v23 = vld [vmem:[#allocation2 + $0xa8] ss:$16 sps:$4 sm:$0xff]   ;;  %v3207_v24 = vld [vmem:[#allocation2 + $0xc4] ss:$16 sps:$4 sm:$0xff]   ;;  %v3209_v25 = vld [vmem:[#allocation2 + $0xcc] ss:$16 sps:$4 sm:$0xff]  }
  0x76   :  { %v3211_v26 = vld [vmem:[#allocation2 + $0xc0] ss:$16 sps:$4 sm:$0xff]   ;;  %v3212_v27 = vld [vmem:[#allocation2 + $0xc8] ss:$16 sps:$4 sm:$0xff]   ;;  %v3213_v28 = vld [vmem:[#allocation2 + $0xe4] ss:$16 sps:$4 sm:$0xff]  }
  0x77   :  { %1332 = vmatpush1.bf16.msra.mxu0 %v3187_v10  ;;  %1455 = vmatpush1.bf16.msra.mxu1 %v3188_v11  ;;  %v3215_v29 = vld [vmem:[#allocation2 + $0xec] ss:$16 sps:$4 sm:$0xff]   ;;  %v3217_v30 = vld [vmem:[#allocation2 + $0xe0] ss:$16 sps:$4 sm:$0xff]   ;;  %v3218_v31 = vld [vmem:[#allocation2 + $0xe8] ss:$16 sps:$4 sm:$0xff]  }
  0x78   :  { %1333 = vmatprep.subr.bf16.mxu0 %v3189_v12  ;;  %1456 = vmatprep.subr.bf16.mxu1 %v3191_v13  ;;  %v3219_v32 = vld [vmem:[#allocation2 + $0x104] ss:$16 sps:$4 sm:$0xff]   ;;  %v3221_v33 = vld [vmem:[#allocation2 + $0x10c] ss:$16 sps:$4 sm:$0xff]   ;;  %v3223_v34 = vld [vmem:[#allocation2 + $0x100] ss:$16 sps:$4 sm:$0xff]  }
  0x79   :  { %v3224_v35 = vld [vmem:[#allocation2 + $0x108] ss:$16 sps:$4 sm:$0xff]   ;;  %v3772_v36 = vmov 1983009808   ;;  %v3225_v39 = vld [vmem:[#allocation2 + $0x124] ss:$16 sps:$4 sm:$0xff]  }
  0x7a   :  { %v118_v37 = vunpack.c.l.s4 %v3772_v36  ;;  %v3227_v40 = vld [vmem:[#allocation2 + $0x12c] ss:$16 sps:$4 sm:$0xff]   ;;  %v3229_v41 = vld [vmem:[#allocation2 + $0x120] ss:$16 sps:$4 sm:$0xff]   ;;  %v3906_v43 = vshrl.u32 %v120_v38, 7 }
  0x7b   :  { %1334 = vmatpush1.bf16.msra.mxu0 %v3193_v14  ;;  %1457 = vmatpush1.bf16.msra.mxu1 %v3194_v15  ;;  %v3230_v44 = vld [vmem:[#allocation2 + $0x128] ss:$16 sps:$4 sm:$0xff]   ;;  %v3231_v45 = vld [vmem:[#allocation2 + $0x144] ss:$16 sps:$4 sm:$0xff]   ;;  %v3233_v46 = vld [vmem:[#allocation2 + $0x14c] ss:$16 sps:$4 sm:$0xff]  }
  0x7c   :  { %1335 = vmatprep.subr.bf16.mxu0 %v3195_v16  ;;  %1458 = vmatprep.subr.bf16.mxu1 %v3197_v17  ;;  %v119_v42 = vunpack.c.0.s8 %v118_v37  ;;  %v3235_v47 = vld [vmem:[#allocation2 + $0x140] ss:$16 sps:$4 sm:$0xff]   ;;  %v3236_v48 = vld [vmem:[#allocation2 + $0x148] ss:$16 sps:$4 sm:$0xff]   ;;  %v3237_v50 = vld [vmem:[#allocation2 + $0x164] ss:$16 sps:$4 sm:$0xff]  }
  0x7d   :  { %v3239_v51 = vld [vmem:[#allocation2 + $0x16c] ss:$16 sps:$4 sm:$0xff]   ;;  %v112_v52 = vld [vmem:[%s3973_s0] sm:$0xff]  ;;  %v3242_v55 = vld [vmem:[#allocation2 + $0x168] ss:$16 sps:$4 sm:$0xff]  }
  0x7e   :  { %v122_v49 = vsub.s32 %v119_v42, %v3906_v43  ;;  %v3241_v53 = vld [vmem:[#allocation2 + $0x160] ss:$16 sps:$4 sm:$0xff]   ;;  %v3243_v56 = vld [vmem:[#allocation2 + $0x184] ss:$16 sps:$4 sm:$0xff]   ;;  %v3245_v57 = vld [vmem:[#allocation2 + $0x18c] ss:$16 sps:$4 sm:$0xff]   ;;  %v116_v4 = vcombine.high %v112_v52, %v112_v52 }
  0x7f   :  { %1336 = vmatpush1.bf16.msra.mxu0 %v3199_v18  ;;  %1459 = vmatpush1.bf16.msra.mxu1 %v3200_v19  ;;  %v3247_v59 = vld [vmem:[#allocation2 + $0x180] ss:$16 sps:$4 sm:$0xff]   ;;  %v3248_v61 = vld [vmem:[#allocation2 + $0x188] ss:$16 sps:$4 sm:$0xff]   ;;  %v3249_v62 = vld [vmem:[#allocation2 + $0x1a4] ss:$16 sps:$4 sm:$0xff]  }
  0x80   :  { %1337 = vmatprep.subr.bf16.mxu0 %v3201_v20  ;;  %1460 = vmatprep.subr.bf16.mxu1 %v3203_v21  ;;  %v123_v54 = vrot.slane %v112_v52, %v122_v49  ;;  %v3251_v63 = vld [vmem:[#allocation2 + $0x1ac] ss:$16 sps:$4 sm:$0xff]   ;;  %v3253_v0 = vld [vmem:[#allocation2 + $0x1a0] ss:$16 sps:$4 sm:$0xff]   ;;  %v3254_v1 = vld [vmem:[#allocation2 + $0x1a8] ss:$16 sps:$4 sm:$0xff]   ;;  %v3912_v9 = vrot.slane %v116_v4, %v122_v49 }
  0x81   :  { %v3255_v2 = vld [vmem:[#allocation2 + $0x1c4] ss:$16 sps:$4 sm:$0xff]   ;;  %v3257_v3 = vld [vmem:[#allocation2 + $0x1cc] ss:$16 sps:$4 sm:$0xff]   ;;  %v3259_v5 = vld [vmem:[#allocation2 + $0x1c0] ss:$16 sps:$4 sm:$0xff]  }
  0x82   :  { %v131_v58 = vcombine.high %v123_v54, %v123_v54  ;;  %v3260_v6 = vld [vmem:[#allocation2 + $0x1c8] ss:$16 sps:$4 sm:$0xff]   ;;  %v3261_v7 = vld [vmem:[#allocation2 + $0x1e4] ss:$16 sps:$4 sm:$0xff]   ;;  %v3263_v8 = vld [vmem:[#allocation2 + $0x1ec] ss:$16 sps:$4 sm:$0xff]   ;;  %v132_v14 = vcombine.high %v3912_v9, %v3912_v9  ;;  %v147_v16 = vpack.c.bf16 %v123_v54, %v123_v54 }
  0x83   :  { %1338 = vmatpush1.bf16.msra.mxu0 %v3205_v22  ;;  %1461 = vmatpush1.bf16.msra.mxu1 %v3206_v23  ;;  %v3265_v10 = vld [vmem:[#allocation2 + $0x1e0] ss:$16 sps:$4 sm:$0xff]   ;;  %v3266_v11 = vld [vmem:[#allocation2 + $0x1e8] ss:$16 sps:$4 sm:$0xff]   ;;  %v3270_v12 = vld [vmem:[#allocation2 + $0x204] ss:$16 sps:$4 sm:$0xff]  }
  0x84   :  { %1339 = vmatprep.subr.bf16.mxu0 %v3207_v24  ;;  %1462 = vmatprep.subr.bf16.mxu1 %v3209_v25  ;;  %v148_v60 = vpack.c.bf16 %v131_v58, %v131_v58  ;;  %v3273_v13 = vld [vmem:[#allocation2 + $0x20c] ss:$16 sps:$4 sm:$0xff]   ;;  %v3268_v15 = vld [vmem:[#allocation2 + $0x200] ss:$16 sps:$4 sm:$0xff]   ;;  %v3271_v17 = vld [vmem:[#allocation2 + $0x208] ss:$16 sps:$4 sm:$0xff]   ;;  %v150_v20 = vpack.c.bf16 %v132_v14, %v132_v14 }
  0x85   :  { %v3276_v18 = vld [vmem:[#allocation2 + $0x224] ss:$16 sps:$4 sm:$0xff]   ;;  %v3279_v19 = vld [vmem:[#allocation2 + $0x22c] ss:$16 sps:$4 sm:$0xff]   ;;  %v3274_v21 = vld [vmem:[#allocation2 + $0x220] ss:$16 sps:$4 sm:$0xff]  }
  0x86   :  { %1359 = vmatprep.mubr.bf16.mxu0 %v148_v60  ;;  %1482 = vmatprep.mubr.bf16.mxu1 %v148_v60  ;;  %v3277_v22 = vld [vmem:[#allocation2 + $0x228] ss:$16 sps:$4 sm:$0xff]   ;;  %v3282_v23 = vld [vmem:[#allocation2 + $0x244] ss:$16 sps:$4 sm:$0xff]   ;;  %v3285_v24 = vld [vmem:[#allocation2 + $0x24c] ss:$16 sps:$4 sm:$0xff]  }
  0x87   :  { %1340 = vmatpush1.bf16.msra.mxu0 %v3211_v26  ;;  %1463 = vmatpush1.bf16.msra.mxu1 %v3212_v27  ;;  %v3280_v25 = vld [vmem:[#allocation2 + $0x240] ss:$16 sps:$4 sm:$0xff]   ;;  %v3283_v26 = vld [vmem:[#allocation2 + $0x248] ss:$16 sps:$4 sm:$0xff]   ;;  %v3288_v27 = vld [vmem:[#allocation2 + $0x264] ss:$16 sps:$4 sm:$0xff]  }
  0x88   :  { %1341 = vmatprep.subr.bf16.mxu0 %v3213_v28  ;;  %1464 = vmatprep.subr.bf16.mxu1 %v3215_v29  ;;  %v3291_v28 = vld [vmem:[#allocation2 + $0x26c] ss:$16 sps:$4 sm:$0xff]   ;;  %v3286_v29 = vld [vmem:[#allocation2 + $0x260] ss:$16 sps:$4 sm:$0xff]   ;;  %v3301_v38 = vld [vmem:[#allocation2 + $0x2a8] ss:$16 sps:$4 sm:$0xff]  }
  0x89   :  { %v3303_v36 = vld [vmem:[#allocation2 + $0x2ac] ss:$16 sps:$4 sm:$0xff]   ;;  %v3298_v37 = vld [vmem:[#allocation2 + $0x2a0] ss:$16 sps:$4 sm:$0xff]   ;;  %v3307_v42 = vld [vmem:[#allocation2 + $0x2c8] ss:$16 sps:$4 sm:$0xff]  }
  0x8a   :  { %v3321_v49 = vld [vmem:[#allocation2 + $0x30c] ss:$16 sps:$4 sm:$0xff]   ;;  %v3324_v52 = vld [vmem:[#allocation2 + $0x324] ss:$16 sps:$4 sm:$0xff]   ;;  %v3322_v54 = vld [vmem:[#allocation2 + $0x320] ss:$16 sps:$4 sm:$0xff]  }
  0x8b   :  { %1342 = vmatpush1.bf16.msra.mxu0 %v3217_v30  ;;  %1465 = vmatpush1.bf16.msra.mxu1 %v3218_v31  ;;  %v3289_v30 = vld [vmem:[#allocation2 + $0x268] ss:$16 sps:$4 sm:$0xff]   ;;  %v3294_v31 = vld [vmem:[#allocation2 + $0x284] ss:$16 sps:$4 sm:$0xff]   ;;  %v3328_v58 = vld [vmem:[#allocation2 + $0x340] ss:$16 sps:$4 sm:$0xff]  }
  0x8c   :  { %1343 = vmatprep.subr.bf16.mxu0 %v3219_v32  ;;  %1466 = vmatprep.subr.bf16.mxu1 %v3221_v33  ;;  %v3297_v32 = vld [vmem:[#allocation2 + $0x28c] ss:$16 sps:$4 sm:$0xff]   ;;  %v3292_v33 = vld [vmem:[#allocation2 + $0x280] ss:$16 sps:$4 sm:$0xff]   ;;  %v3336_v60 = vld [vmem:[#allocation2 + $0x364] ss:$16 sps:$4 sm:$0xff]  }
  0x8d   :  { %v3348_v4 = vld [vmem:[#allocation2 + $0x3a4] ss:$16 sps:$4 sm:$0xff]   ;;  %v3363_v14 = vld [vmem:[#allocation2 + $0x3ec] ss:$16 sps:$4 sm:$0xff]  }
  0x8f   :  { %1344 = vmatpush1.bf16.msra.mxu0 %v3223_v34  ;;  %1467 = vmatpush1.bf16.msra.mxu1 %v3224_v35  ;;  %v3295_v34 = vld [vmem:[#allocation2 + $0x288] ss:$16 sps:$4 sm:$0xff]   ;;  %v3300_v35 = vld [vmem:[#allocation2 + $0x2a4] ss:$16 sps:$4 sm:$0xff]  }
  0x90   :  { %1345 = vmatprep.subr.bf16.mxu0 %v3225_v39  ;;  %1468 = vmatprep.subr.bf16.mxu1 %v3227_v40  ;;  %v3306_v39 = vld [vmem:[#allocation2 + $0x2c4] ss:$16 sps:$4 sm:$0xff]   ;;  %v3309_v40 = vld [vmem:[#allocation2 + $0x2cc] ss:$16 sps:$4 sm:$0xff]  }
  0x93   :  { %1346 = vmatpush1.bf16.msra.mxu0 %v3229_v41  ;;  %1469 = vmatpush1.bf16.msra.mxu1 %v3230_v44  ;;  %v3304_v41 = vld [vmem:[#allocation2 + $0x2c0] ss:$16 sps:$4 sm:$0xff]   ;;  %v3312_v44 = vld [vmem:[#allocation2 + $0x2e4] ss:$16 sps:$4 sm:$0xff]  }
  0x94   :  { %1347 = vmatprep.subr.bf16.mxu0 %v3231_v45  ;;  %1470 = vmatprep.subr.bf16.mxu1 %v3233_v46  ;;  %v3315_v45 = vld [vmem:[#allocation2 + $0x2ec] ss:$16 sps:$4 sm:$0xff]   ;;  %v3310_v46 = vld [vmem:[#allocation2 + $0x2e0] ss:$16 sps:$4 sm:$0xff]  }
  0x97   :  { %1348 = vmatpush1.bf16.msra.mxu0 %v3235_v47  ;;  %1471 = vmatpush1.bf16.msra.mxu1 %v3236_v48  ;;  %v3313_v47 = vld [vmem:[#allocation2 + $0x2e8] ss:$16 sps:$4 sm:$0xff]   ;;  %v3318_v48 = vld [vmem:[#allocation2 + $0x304] ss:$16 sps:$4 sm:$0xff]  }
  0x98   :  { %1349 = vmatprep.subr.bf16.mxu0 %v3237_v50  ;;  %1472 = vmatprep.subr.bf16.mxu1 %v3239_v51  ;;  %v3316_v50 = vld [vmem:[#allocation2 + $0x300] ss:$16 sps:$4 sm:$0xff]   ;;  %v3319_v51 = vld [vmem:[#allocation2 + $0x308] ss:$16 sps:$4 sm:$0xff]  }
  0x9b   :  { %1350 = vmatpush1.bf16.msra.mxu0 %v3241_v53  ;;  %1473 = vmatpush1.bf16.msra.mxu1 %v3242_v55  ;;  %v3327_v53 = vld [vmem:[#allocation2 + $0x32c] ss:$16 sps:$4 sm:$0xff]   ;;  %v3325_v55 = vld [vmem:[#allocation2 + $0x328] ss:$16 sps:$4 sm:$0xff]  }
  0x9c   :  { %1351 = vmatprep.subr.bf16.mxu0 %v3243_v56  ;;  %1474 = vmatprep.subr.bf16.mxu1 %v3245_v57  ;;  %v3330_v56 = vld [vmem:[#allocation2 + $0x344] ss:$16 sps:$4 sm:$0xff]   ;;  %v3333_v57 = vld [vmem:[#allocation2 + $0x34c] ss:$16 sps:$4 sm:$0xff]  }
  0x9f   :  { %1352 = vmatpush1.bf16.msra.mxu0 %v3247_v59  ;;  %1475 = vmatpush1.bf16.msra.mxu1 %v3248_v61  ;;  %v3331_v59 = vld [vmem:[#allocation2 + $0x348] ss:$16 sps:$4 sm:$0xff]   ;;  %v3339_v61 = vld [vmem:[#allocation2 + $0x36c] ss:$16 sps:$4 sm:$0xff]  }
  0xa0   :  { %1353 = vmatprep.subr.bf16.mxu0 %v3249_v62  ;;  %1476 = vmatprep.subr.bf16.mxu1 %v3251_v63  ;;  %v3334_v62 = vld [vmem:[#allocation2 + $0x360] ss:$16 sps:$4 sm:$0xff]   ;;  %v3337_v63 = vld [vmem:[#allocation2 + $0x368] ss:$16 sps:$4 sm:$0xff]  }
  0xa3   :  { %1354 = vmatpush1.bf16.msra.mxu0 %v3253_v0  ;;  %1477 = vmatpush1.bf16.msra.mxu1 %v3254_v1  ;;  %v3342_v0 = vld [vmem:[#allocation2 + $0x384] ss:$16 sps:$4 sm:$0xff]   ;;  %v3345_v1 = vld [vmem:[#allocation2 + $0x38c] ss:$16 sps:$4 sm:$0xff]  }
  0xa4   :  { %1355 = vmatprep.subr.bf16.mxu0 %v3255_v2  ;;  %1478 = vmatprep.subr.bf16.mxu1 %v3257_v3  ;;  %v3340_v2 = vld [vmem:[#allocation2 + $0x380] ss:$16 sps:$4 sm:$0xff]   ;;  %v3343_v3 = vld [vmem:[#allocation2 + $0x388] ss:$16 sps:$4 sm:$0xff]  }
  0xa7   :  { %1356 = vmatpush1.bf16.msra.mxu0 %v3259_v5  ;;  %1479 = vmatpush1.bf16.msra.mxu1 %v3260_v6  ;;  %v3351_v5 = vld [vmem:[#allocation2 + $0x3ac] ss:$16 sps:$4 sm:$0xff]   ;;  %v3346_v6 = vld [vmem:[#allocation2 + $0x3a0] ss:$16 sps:$4 sm:$0xff]  }
  0xa8   :  { %1357 = vmatprep.subr.bf16.mxu0 %v3261_v7  ;;  %1480 = vmatprep.subr.bf16.mxu1 %v3263_v8  ;;  %v3349_v7 = vld [vmem:[#allocation2 + $0x3a8] ss:$16 sps:$4 sm:$0xff]   ;;  %v3354_v8 = vld [vmem:[#allocation2 + $0x3c4] ss:$16 sps:$4 sm:$0xff]  }
  0xab   :  { %1358 = vmatpush1.bf16.msra.mxu0 %v3265_v10  ;;  %1481 = vmatpush1.bf16.msra.mxu1 %v3266_v11  ;;  %v3357_v10 = vld [vmem:[#allocation2 + $0x3cc] ss:$16 sps:$4 sm:$0xff]   ;;  %v3352_v11 = vld [vmem:[#allocation2 + $0x3c0] ss:$16 sps:$4 sm:$0xff]  }
  0xac   :  { %1368 = vmatprep.subr.bf16.mxu0 %v3270_v12  ;;  %1491 = vmatprep.subr.bf16.mxu1 %v3273_v13  ;;  %v3355_v12 = vld [vmem:[#allocation2 + $0x3c8] ss:$16 sps:$4 sm:$0xff]   ;;  %v3360_v13 = vld [vmem:[#allocation2 + $0x3e4] ss:$16 sps:$4 sm:$0xff]  }
  0xae   :  { %1360 = vmatmul.mubr.bf16.vlgmr.msra.gmra.mrb[0].mxu0 %v147_v16  ;;  %1483 = vmatmul.mubr.bf16.vlgmr.msra.gmra.mrb[0].mxu1 %v147_v16  ;;  %v3361_v16 = vld [vmem:[#allocation2 + $0x3e8] ss:$16 sps:$4 sm:$0xff]  }
  0xaf   :  { %1369 = vmatpush1.bf16.msra.mxu0 %v3268_v15  ;;  %1492 = vmatpush1.bf16.msra.mxu1 %v3271_v17  ;;  %v3358_v15 = vld [vmem:[#allocation2 + $0x3e0] ss:$16 sps:$4 sm:$0xff]   ;;  %v3366_v17 = vld [vmem:[#allocation2 + $0x404] ss:$16 sps:$4 sm:$0xff]  }
  0xb0   :  { %1370 = vmatprep.subr.bf16.mxu0 %v3276_v18  ;;  %1493 = vmatprep.subr.bf16.mxu1 %v3279_v19  ;;  %v3369_v18 = vld [vmem:[#allocation2 + $0x40c] ss:$16 sps:$4 sm:$0xff]   ;;  %v3364_v19 = vld [vmem:[#allocation2 + $0x400] ss:$16 sps:$4 sm:$0xff]  }
  0xb1   :  { %1400 = vmatprep.mubr.bf16.mxu0 %v150_v20  ;;  %1523 = vmatprep.mubr.bf16.mxu1 %v150_v20  ;;  %v3367_v20 = vld [vmem:[#allocation2 + $0x408] ss:$16 sps:$4 sm:$0xff]  }
  0xb3   :  { %1371 = vmatpush1.bf16.msra.mxu0 %v3274_v21  ;;  %1494 = vmatpush1.bf16.msra.mxu1 %v3277_v22  ;;  %v149_v21 = vpack.c.bf16 %v3912_v9, %v3912_v9  ;;  %v3372_v22 = vld [vmem:[#allocation2 + $0x424] ss:$16 sps:$4 sm:$0xff]   ;;  %v3373_v9 = vld [vmem:[#allocation2 + $0x428] ss:$16 sps:$4 sm:$0xff]  }
  0xb4   :  { %1372 = vmatprep.subr.bf16.mxu0 %v3282_v23  ;;  %1495 = vmatprep.subr.bf16.mxu1 %v3285_v24  ;;  %v3921_v23 = vld.sshfl [vmem:[%s3973_s0 + $0x8] sm:$0x33 pattern:$0x76325410]  ;;  %v3375_v24 = vld [vmem:[#allocation2 + $0x42c] ss:$16 sps:$4 sm:$0xff]  }
  0xb7   :  { %1373 = vmatpush1.bf16.msra.mxu0 %v3280_v25  ;;  %1496 = vmatpush1.bf16.msra.mxu1 %v3283_v26  ;;  %v140_v25 = vcombine.high %v3921_v23, %v3921_v23  ;;  %v3370_v26 = vld [vmem:[#allocation2 + $0x420] ss:$16 sps:$4 sm:$0xff]  }
  0xb8   :  { %1374 = vmatprep.subr.bf16.mxu0 %v3288_v27  ;;  %1497 = vmatprep.subr.bf16.mxu1 %v3291_v28  ;;  %v3378_v28 = vld [vmem:[#allocation2 + $0x444] ss:$16 sps:$4 sm:$0xff]  }
  0xb9   :  { %v152_v27 = vpack.c.bf16 %v140_v25, %v140_v25  ;;  %v3460_v25 = vld [vmem:[#allocation4] ss:$8 sps:$4 sm:$0xff]  }
  0xbb   :  { %1375 = vmatpush1.bf16.msra.mxu0 %v3286_v29  ;;  %1498 = vmatpush1.bf16.msra.mxu1 %v3289_v30  ;;  %v3381_v29 = vld [vmem:[#allocation2 + $0x44c] ss:$16 sps:$4 sm:$0xff]   ;;  %v3376_v30 = vld [vmem:[#allocation2 + $0x440] ss:$16 sps:$4 sm:$0xff]  }
  0xbc   :  { %1376 = vmatprep.subr.bf16.mxu0 %v3294_v31  ;;  %1499 = vmatprep.subr.bf16.mxu1 %v3297_v32  ;;  %v3379_v31 = vld [vmem:[#allocation2 + $0x448] ss:$16 sps:$4 sm:$0xff]   ;;  %v3384_v32 = vld [vmem:[#allocation2 + $0x464] ss:$16 sps:$4 sm:$0xff]  }
  0xbf   :  { %1377 = vmatpush1.bf16.msra.mxu0 %v3292_v33  ;;  %1500 = vmatpush1.bf16.msra.mxu1 %v3295_v34  ;;  %v3387_v33 = vld [vmem:[#allocation2 + $0x46c] ss:$16 sps:$4 sm:$0xff]   ;;  %v3382_v34 = vld [vmem:[#allocation2 + $0x460] ss:$16 sps:$4 sm:$0xff]  }
  0xc0   :  { %1378 = vmatprep.subr.bf16.mxu0 %v3300_v35  ;;  %1501 = vmatprep.subr.bf16.mxu1 %v3303_v36  ;;  %v3385_v35 = vld [vmem:[#allocation2 + $0x468] ss:$16 sps:$4 sm:$0xff]   ;;  %v3390_v36 = vld [vmem:[#allocation2 + $0x484] ss:$16 sps:$4 sm:$0xff]  }
  0xc3   :  { %1379 = vmatpush1.bf16.msra.mxu0 %v3298_v37  ;;  %1502 = vmatpush1.bf16.msra.mxu1 %v3301_v38  ;;  %v3393_v37 = vld [vmem:[#allocation2 + $0x48c] ss:$16 sps:$4 sm:$0xff]   ;;  %v3388_v38 = vld [vmem:[#allocation2 + $0x480] ss:$16 sps:$4 sm:$0xff]  }
  0xc4   :  { %1380 = vmatprep.subr.bf16.mxu0 %v3306_v39  ;;  %1503 = vmatprep.subr.bf16.mxu1 %v3309_v40  ;;  %v3391_v39 = vld [vmem:[#allocation2 + $0x488] ss:$16 sps:$4 sm:$0xff]   ;;  %v3396_v40 = vld [vmem:[#allocation2 + $0x4a4] ss:$16 sps:$4 sm:$0xff]  }
  0xc7   :  { %1381 = vmatpush1.bf16.msra.mxu0 %v3304_v41  ;;  %1504 = vmatpush1.bf16.msra.mxu1 %v3307_v42  ;;  %v3399_v41 = vld [vmem:[#allocation2 + $0x4ac] ss:$16 sps:$4 sm:$0xff]   ;;  %v3394_v42 = vld [vmem:[#allocation2 + $0x4a0] ss:$16 sps:$4 sm:$0xff]  }
  0xc8   :  { %1382 = vmatprep.subr.bf16.mxu0 %v3312_v44  ;;  %1505 = vmatprep.subr.bf16.mxu1 %v3315_v45  ;;  %v3397_v44 = vld [vmem:[#allocation2 + $0x4a8] ss:$16 sps:$4 sm:$0xff]   ;;  %v3402_v45 = vld [vmem:[#allocation2 + $0x4c4] ss:$16 sps:$4 sm:$0xff]  }
  0xcb   :  { %1383 = vmatpush1.bf16.msra.mxu0 %v3310_v46  ;;  %1506 = vmatpush1.bf16.msra.mxu1 %v3313_v47  ;;  %v3405_v46 = vld [vmem:[#allocation2 + $0x4cc] ss:$16 sps:$4 sm:$0xff]   ;;  %v3400_v47 = vld [vmem:[#allocation2 + $0x4c0] ss:$16 sps:$4 sm:$0xff]  }
  0xcc   :  { %1384 = vmatprep.subr.bf16.mxu0 %v3318_v48  ;;  %1507 = vmatprep.subr.bf16.mxu1 %v3321_v49  ;;  %v3403_v48 = vld [vmem:[#allocation2 + $0x4c8] ss:$16 sps:$4 sm:$0xff]   ;;  %v3408_v49 = vld [vmem:[#allocation2 + $0x4e4] ss:$16 sps:$4 sm:$0xff]  }
  0xcf   :  { %1385 = vmatpush1.bf16.msra.mxu0 %v3316_v50  ;;  %1508 = vmatpush1.bf16.msra.mxu1 %v3319_v51  ;;  %v3411_v50 = vld [vmem:[#allocation2 + $0x4ec] ss:$16 sps:$4 sm:$0xff]   ;;  %v3406_v51 = vld [vmem:[#allocation2 + $0x4e0] ss:$16 sps:$4 sm:$0xff]  }
  0xd0   :  { %1386 = vmatprep.subr.bf16.mxu0 %v3324_v52  ;;  %1509 = vmatprep.subr.bf16.mxu1 %v3327_v53  ;;  %v3409_v52 = vld [vmem:[#allocation2 + $0x4e8] ss:$16 sps:$4 sm:$0xff]   ;;  %v3414_v53 = vld [vmem:[#allocation2 + $0x504] ss:$16 sps:$4 sm:$0xff]  }
  0xd3   :  { %1387 = vmatpush1.bf16.msra.mxu0 %v3322_v54  ;;  %1510 = vmatpush1.bf16.msra.mxu1 %v3325_v55  ;;  %v3417_v54 = vld [vmem:[#allocation2 + $0x50c] ss:$16 sps:$4 sm:$0xff]   ;;  %v3412_v55 = vld [vmem:[#allocation2 + $0x500] ss:$16 sps:$4 sm:$0xff]  }
  0xd4   :  { %1388 = vmatprep.subr.bf16.mxu0 %v3330_v56  ;;  %1511 = vmatprep.subr.bf16.mxu1 %v3333_v57  ;;  %v3415_v56 = vld [vmem:[#allocation2 + $0x508] ss:$16 sps:$4 sm:$0xff]   ;;  %v3420_v57 = vld [vmem:[#allocation2 + $0x524] ss:$16 sps:$4 sm:$0xff]  }
  0xd7   :  { %1389 = vmatpush1.bf16.msra.mxu0 %v3328_v58  ;;  %1512 = vmatpush1.bf16.msra.mxu1 %v3331_v59  ;;  %v3423_v58 = vld [vmem:[#allocation2 + $0x52c] ss:$16 sps:$4 sm:$0xff]   ;;  %v3418_v59 = vld [vmem:[#allocation2 + $0x520] ss:$16 sps:$4 sm:$0xff]  }
  0xd8   :  { %1390 = vmatprep.subr.bf16.mxu0 %v3336_v60  ;;  %1513 = vmatprep.subr.bf16.mxu1 %v3339_v61  ;;  %v3421_v60 = vld [vmem:[#allocation2 + $0x528] ss:$16 sps:$4 sm:$0xff]   ;;  %v3426_v61 = vld [vmem:[#allocation2 + $0x544] ss:$16 sps:$4 sm:$0xff]  }
  0xdb   :  { %1391 = vmatpush1.bf16.msra.mxu0 %v3334_v62  ;;  %1514 = vmatpush1.bf16.msra.mxu1 %v3337_v63  ;;  %v3429_v62 = vld [vmem:[#allocation2 + $0x54c] ss:$16 sps:$4 sm:$0xff]   ;;  %v3424_v63 = vld [vmem:[#allocation2 + $0x540] ss:$16 sps:$4 sm:$0xff]  }
  0xdc   :  { %1392 = vmatprep.subr.bf16.mxu0 %v3342_v0  ;;  %1515 = vmatprep.subr.bf16.mxu1 %v3345_v1  ;;  %v3427_v0 = vld [vmem:[#allocation2 + $0x548] ss:$16 sps:$4 sm:$0xff]   ;;  %v3432_v1 = vld [vmem:[#allocation2 + $0x564] ss:$16 sps:$4 sm:$0xff]  }
  0xdf   :  { %1393 = vmatpush1.bf16.msra.mxu0 %v3340_v2  ;;  %1516 = vmatpush1.bf16.msra.mxu1 %v3343_v3  ;;  %v3435_v2 = vld [vmem:[#allocation2 + $0x56c] ss:$16 sps:$4 sm:$0xff]   ;;  %v3430_v3 = vld [vmem:[#allocation2 + $0x560] ss:$16 sps:$4 sm:$0xff]  }
  0xe0   :  { %1394 = vmatprep.subr.bf16.mxu0 %v3348_v4  ;;  %1517 = vmatprep.subr.bf16.mxu1 %v3351_v5  ;;  %v3433_v4 = vld [vmem:[#allocation2 + $0x568] ss:$16 sps:$4 sm:$0xff]   ;;  %v3438_v5 = vld [vmem:[#allocation2 + $0x584] ss:$16 sps:$4 sm:$0xff]  }
  0xe3   :  { %1395 = vmatpush1.bf16.msra.mxu0 %v3346_v6  ;;  %1518 = vmatpush1.bf16.msra.mxu1 %v3349_v7  ;;  %v3441_v6 = vld [vmem:[#allocation2 + $0x58c] ss:$16 sps:$4 sm:$0xff]   ;;  %v3436_v7 = vld [vmem:[#allocation2 + $0x580] ss:$16 sps:$4 sm:$0xff]  }
  0xe4   :  { %1396 = vmatprep.subr.bf16.mxu0 %v3354_v8  ;;  %1519 = vmatprep.subr.bf16.mxu1 %v3357_v10  ;;  %v3439_v8 = vld [vmem:[#allocation2 + $0x588] ss:$16 sps:$4 sm:$0xff]   ;;  %v3444_v10 = vld [vmem:[#allocation2 + $0x5a4] ss:$16 sps:$4 sm:$0xff]  }
  0xe7   :  { %1397 = vmatpush1.bf16.msra.mxu0 %v3352_v11  ;;  %1520 = vmatpush1.bf16.msra.mxu1 %v3355_v12  ;;  %v3447_v11 = vld [vmem:[#allocation2 + $0x5ac] ss:$16 sps:$4 sm:$0xff]   ;;  %v3442_v12 = vld [vmem:[#allocation2 + $0x5a0] ss:$16 sps:$4 sm:$0xff]  }
  0xe8   :  { %1398 = vmatprep.subr.bf16.mxu0 %v3360_v13  ;;  %1521 = vmatprep.subr.bf16.mxu1 %v3363_v14  ;;  %v3445_v13 = vld [vmem:[#allocation2 + $0x5a8] ss:$16 sps:$4 sm:$0xff]   ;;  %v3450_v14 = vld [vmem:[#allocation2 + $0x5c4] ss:$16 sps:$4 sm:$0xff]  }
  0xeb   :  { %1399 = vmatpush1.bf16.msra.mxu0 %v3358_v15  ;;  %1522 = vmatpush1.bf16.msra.mxu1 %v3361_v16  ;;  %v3453_v15 = vld [vmem:[#allocation2 + $0x5cc] ss:$16 sps:$4 sm:$0xff]   ;;  %v3448_v16 = vld [vmem:[#allocation2 + $0x5c0] ss:$16 sps:$4 sm:$0xff]  }
  0xec   :  { %1409 = vmatprep.subr.bf16.mxu0 %v3366_v17  ;;  %1532 = vmatprep.subr.bf16.mxu1 %v3369_v18  ;;  %v3451_v17 = vld [vmem:[#allocation2 + $0x5c8] ss:$16 sps:$4 sm:$0xff]   ;;  %v3456_v18 = vld [vmem:[#allocation2 + $0x5e4] ss:$16 sps:$4 sm:$0xff]  }
  0xee   :  { %1401 = vmatmul.mubr.bf16.vlgmr.msra.gmra.mrb[0].mxu0 %v149_v21  ;;  %1524 = vmatmul.mubr.bf16.vlgmr.msra.gmra.mrb[0].mxu1 %v149_v21  ;;  %v3457_v21 = vld [vmem:[#allocation2 + $0x5e8] ss:$16 sps:$4 sm:$0xff]  }
  0xef   :  { %1410 = vmatpush1.bf16.msra.mxu0 %v3364_v19  ;;  %1533 = vmatpush1.bf16.msra.mxu1 %v3367_v20  ;;  %v3459_v19 = vld [vmem:[#allocation2 + $0x5ec] ss:$16 sps:$4 sm:$0xff]   ;;  %v3454_v20 = vld [vmem:[#allocation2 + $0x5e0] ss:$16 sps:$4 sm:$0xff]  }
  0xf0   :  { %1411 = vmatprep.subr.bf16.mxu0 %v3372_v22  ;;  %1534 = vmatprep.subr.bf16.mxu1 %v3375_v24  ;;  %v3462_v22 = vld [vmem:[#allocation4 + $0x4] ss:$8 sps:$4 sm:$0xff]   ;;  %v151_v24 = vpack.c.bf16 %v3921_v23, %v3921_v23  ;;  %v3472_v23 = vld [vmem:[#allocation4 + $0x40] ss:$8 sps:$4 sm:$0xff]  }
  0xf1   :  { %1441 = vmatprep.mubr.bf16.mxu0 %v152_v27  ;;  %1564 = vmatprep.mubr.bf16.mxu1 %v152_v27  ;;  %v3463_v27 = vld [vmem:[#allocation4 + $0x10] ss:$8 sps:$4 sm:$0xff]  }
  0xf3   :  { %1412 = vmatpush1.bf16.msra.mxu0 %v3370_v26  ;;  %1535 = vmatpush1.bf16.msra.mxu1 %v3373_v9  ;;  %v3465_v26 = vld [vmem:[#allocation4 + $0x14] ss:$8 sps:$4 sm:$0xff]   ;;  %v3468_v9 = vld [vmem:[#allocation4 + $0x24] ss:$8 sps:$4 sm:$0xff]  }
  0xf4   :  { %1413 = vmatprep.subr.bf16.mxu0 %v3378_v28  ;;  %1536 = vmatprep.subr.bf16.mxu1 %v3381_v29  ;;  %v3466_v28 = vld [vmem:[#allocation4 + $0x20] ss:$8 sps:$4 sm:$0xff]   ;;  %v3471_v29 = vld [vmem:[#allocation4 + $0x34] ss:$8 sps:$4 sm:$0xff]  }
  0xf7   :  { %1414 = vmatpush1.bf16.msra.mxu0 %v3376_v30  ;;  %1537 = vmatpush1.bf16.msra.mxu1 %v3379_v31  ;;  %v3469_v30 = vld [vmem:[#allocation4 + $0x30] ss:$8 sps:$4 sm:$0xff]   ;;  %v3474_v31 = vld [vmem:[#allocation4 + $0x44] ss:$8 sps:$4 sm:$0xff]  }
  0xf8   :  { %1415 = vmatprep.subr.bf16.mxu0 %v3384_v32  ;;  %1538 = vmatprep.subr.bf16.mxu1 %v3387_v33  ;;  %v3477_v32 = vld [vmem:[#allocation4 + $0x54] ss:$8 sps:$4 sm:$0xff]   ;;  %v3475_v33 = vld [vmem:[#allocation4 + $0x50] ss:$8 sps:$4 sm:$0xff]  }
  0xfb   :  { %1416 = vmatpush1.bf16.msra.mxu0 %v3382_v34  ;;  %1539 = vmatpush1.bf16.msra.mxu1 %v3385_v35  ;;  %v3480_v34 = vld [vmem:[#allocation4 + $0x64] ss:$8 sps:$4 sm:$0xff]   ;;  %v3478_v35 = vld [vmem:[#allocation4 + $0x60] ss:$8 sps:$4 sm:$0xff]  }
  0xfc   :  { %1417 = vmatprep.subr.bf16.mxu0 %v3390_v36  ;;  %1540 = vmatprep.subr.bf16.mxu1 %v3393_v37  ;;  %v3483_v36 = vld [vmem:[#allocation4 + $0x74] ss:$8 sps:$4 sm:$0xff]   ;;  %v3481_v37 = vld [vmem:[#allocation4 + $0x70] ss:$8 sps:$4 sm:$0xff]  }
  0xff   :  { %1418 = vmatpush1.bf16.msra.mxu0 %v3388_v38  ;;  %1541 = vmatpush1.bf16.msra.mxu1 %v3391_v39  ;;  %v3486_v38 = vld [vmem:[#allocation4 + $0x84] ss:$8 sps:$4 sm:$0xff]   ;;  %v3484_v39 = vld [vmem:[#allocation4 + $0x80] ss:$8 sps:$4 sm:$0xff]  }
 0x100   :  { %1419 = vmatprep.subr.bf16.mxu0 %v3396_v40  ;;  %1542 = vmatprep.subr.bf16.mxu1 %v3399_v41  ;;  %v3489_v40 = vld [vmem:[#allocation4 + $0x94] ss:$8 sps:$4 sm:$0xff]   ;;  %v3487_v41 = vld [vmem:[#allocation4 + $0x90] ss:$8 sps:$4 sm:$0xff]  }
 0x103   :  { %1420 = vmatpush1.bf16.msra.mxu0 %v3394_v42  ;;  %1543 = vmatpush1.bf16.msra.mxu1 %v3397_v44  ;;  %v3492_v42 = vld [vmem:[#allocation4 + $0xa4] ss:$8 sps:$4 sm:$0xff]   ;;  %v3490_v44 = vld [vmem:[#allocation4 + $0xa0] ss:$8 sps:$4 sm:$0xff]  }
 0x104   :  { %1421 = vmatprep.subr.bf16.mxu0 %v3402_v45  ;;  %1544 = vmatprep.subr.bf16.mxu1 %v3405_v46  ;;  %v3495_v45 = vld [vmem:[#allocation4 + $0xb4] ss:$8 sps:$4 sm:$0xff]   ;;  %v3493_v46 = vld [vmem:[#allocation4 + $0xb0] ss:$8 sps:$4 sm:$0xff]  }
 0x107   :  { %1422 = vmatpush1.bf16.msra.mxu0 %v3400_v47  ;;  %1545 = vmatpush1.bf16.msra.mxu1 %v3403_v48  ;;  %v3498_v47 = vld [vmem:[#allocation4 + $0xc4] ss:$8 sps:$4 sm:$0xff]   ;;  %v3496_v48 = vld [vmem:[#allocation4 + $0xc0] ss:$8 sps:$4 sm:$0xff]  }
 0x108   :  { %1423 = vmatprep.subr.bf16.mxu0 %v3408_v49  ;;  %1546 = vmatprep.subr.bf16.mxu1 %v3411_v50  ;;  %v3501_v49 = vld [vmem:[#allocation4 + $0xd4] ss:$8 sps:$4 sm:$0xff]   ;;  %v3499_v50 = vld [vmem:[#allocation4 + $0xd0] ss:$8 sps:$4 sm:$0xff]  }
 0x10b   :  { %1424 = vmatpush1.bf16.msra.mxu0 %v3406_v51  ;;  %1547 = vmatpush1.bf16.msra.mxu1 %v3409_v52  ;;  %v3504_v51 = vld [vmem:[#allocation4 + $0xe4] ss:$8 sps:$4 sm:$0xff]   ;;  %v3502_v52 = vld [vmem:[#allocation4 + $0xe0] ss:$8 sps:$4 sm:$0xff]  }
 0x10c   :  { %1425 = vmatprep.subr.bf16.mxu0 %v3414_v53  ;;  %1548 = vmatprep.subr.bf16.mxu1 %v3417_v54  ;;  %v3507_v53 = vld [vmem:[#allocation4 + $0xf4] ss:$8 sps:$4 sm:$0xff]   ;;  %v3505_v54 = vld [vmem:[#allocation4 + $0xf0] ss:$8 sps:$4 sm:$0xff]  }
 0x10f   :  { %1426 = vmatpush1.bf16.msra.mxu0 %v3412_v55  ;;  %1549 = vmatpush1.bf16.msra.mxu1 %v3415_v56  ;;  %v3510_v55 = vld [vmem:[#allocation4 + $0x104] ss:$8 sps:$4 sm:$0xff]   ;;  %v3556_v56 = vld [vmem:[#allocation6] ss:$8 sps:$4 sm:$0xff]  }
 0x110   :  { %1427 = vmatprep.subr.bf16.mxu0 %v3420_v57  ;;  %1550 = vmatprep.subr.bf16.mxu1 %v3423_v58  ;;  %v3558_v57 = vld [vmem:[#allocation6 + $0x4] ss:$8 sps:$4 sm:$0xff]   ;;  %v3561_v58 = vld [vmem:[#allocation6 + $0x14] ss:$8 sps:$4 sm:$0xff]  }
 0x113   :  { %1428 = vmatpush1.bf16.msra.mxu0 %v3418_v59  ;;  %1551 = vmatpush1.bf16.msra.mxu1 %v3421_v60  ;;  %v3559_v59 = vld [vmem:[#allocation6 + $0x10] ss:$8 sps:$4 sm:$0xff]   ;;  %v3564_v60 = vld [vmem:[#allocation6 + $0x24] ss:$8 sps:$4 sm:$0xff]  }
 0x114   :  { %1429 = vmatprep.subr.bf16.mxu0 %v3426_v61  ;;  %1552 = vmatprep.subr.bf16.mxu1 %v3429_v62  ;;  %v3562_v61 = vld [vmem:[#allocation6 + $0x20] ss:$8 sps:$4 sm:$0xff]   ;;  %v3567_v62 = vld [vmem:[#allocation6 + $0x34] ss:$8 sps:$4 sm:$0xff]  }
 0x117   :  { %1430 = vmatpush1.bf16.msra.mxu0 %v3424_v63  ;;  %1553 = vmatpush1.bf16.msra.mxu1 %v3427_v0  ;;  %v3565_v63 = vld [vmem:[#allocation6 + $0x30] ss:$8 sps:$4 sm:$0xff]   ;;  %v3570_v0 = vld [vmem:[#allocation6 + $0x44] ss:$8 sps:$4 sm:$0xff]  }
 0x118   :  { %1431 = vmatprep.subr.bf16.mxu0 %v3432_v1  ;;  %1554 = vmatprep.subr.bf16.mxu1 %v3435_v2  ;;  %v3568_v1 = vld [vmem:[#allocation6 + $0x40] ss:$8 sps:$4 sm:$0xff]   ;;  %v3573_v2 = vld [vmem:[#allocation6 + $0x54] ss:$8 sps:$4 sm:$0xff]  }
 0x11b   :  { %1432 = vmatpush1.bf16.msra.mxu0 %v3430_v3  ;;  %1555 = vmatpush1.bf16.msra.mxu1 %v3433_v4  ;;  %v3571_v3 = vld [vmem:[#allocation6 + $0x50] ss:$8 sps:$4 sm:$0xff]   ;;  %v3576_v4 = vld [vmem:[#allocation6 + $0x64] ss:$8 sps:$4 sm:$0xff]  }
 0x11c   :  { %1433 = vmatprep.subr.bf16.mxu0 %v3438_v5  ;;  %1556 = vmatprep.subr.bf16.mxu1 %v3441_v6  ;;  %v3574_v5 = vld [vmem:[#allocation6 + $0x60] ss:$8 sps:$4 sm:$0xff]   ;;  %v3579_v6 = vld [vmem:[#allocation6 + $0x74] ss:$8 sps:$4 sm:$0xff]  }
 0x11f   :  { %1434 = vmatpush1.bf16.msra.mxu0 %v3436_v7  ;;  %1557 = vmatpush1.bf16.msra.mxu1 %v3439_v8  ;;  %v3577_v7 = vld [vmem:[#allocation6 + $0x70] ss:$8 sps:$4 sm:$0xff]   ;;  %v3582_v8 = vld [vmem:[#allocation6 + $0x84] ss:$8 sps:$4 sm:$0xff]  }
 0x120   :  { %1435 = vmatprep.subr.bf16.mxu0 %v3444_v10  ;;  %1558 = vmatprep.subr.bf16.mxu1 %v3447_v11  ;;  %v3580_v10 = vld [vmem:[#allocation6 + $0x80] ss:$8 sps:$4 sm:$0xff]   ;;  %v3585_v11 = vld [vmem:[#allocation6 + $0x94] ss:$8 sps:$4 sm:$0xff]  }
 0x123   :  { %1436 = vmatpush1.bf16.msra.mxu0 %v3442_v12  ;;  %1559 = vmatpush1.bf16.msra.mxu1 %v3445_v13  ;;  %v3583_v12 = vld [vmem:[#allocation6 + $0x90] ss:$8 sps:$4 sm:$0xff]   ;;  %v3588_v13 = vld [vmem:[#allocation6 + $0xa4] ss:$8 sps:$4 sm:$0xff]  }
 0x124   :  { %1437 = vmatprep.subr.bf16.mxu0 %v3450_v14  ;;  %1560 = vmatprep.subr.bf16.mxu1 %v3453_v15  ;;  %v3586_v14 = vld [vmem:[#allocation6 + $0xa0] ss:$8 sps:$4 sm:$0xff]   ;;  %v3591_v15 = vld [vmem:[#allocation6 + $0xb4] ss:$8 sps:$4 sm:$0xff]  }
 0x127   :  { %1438 = vmatpush1.bf16.msra.mxu0 %v3448_v16  ;;  %1561 = vmatpush1.bf16.msra.mxu1 %v3451_v17  ;;  %v3589_v16 = vld [vmem:[#allocation6 + $0xb0] ss:$8 sps:$4 sm:$0xff]   ;;  %v3594_v17 = vld [vmem:[#allocation6 + $0xc4] ss:$8 sps:$4 sm:$0xff]  }
 0x128   :  { %1439 = vmatprep.subr.bf16.mxu0 %v3456_v18  ;;  %1562 = vmatprep.subr.bf16.mxu1 %v3459_v19  ;;  %v3592_v18 = vld [vmem:[#allocation6 + $0xc0] ss:$8 sps:$4 sm:$0xff]   ;;  %v3928_v19 = vsub.s32 0, %v3906_v43 }
 0x12b   :  { %1440 = vmatpush1.bf16.msra.mxu0 %v3454_v20  ;;  %1563 = vmatpush1.bf16.msra.mxu1 %v3457_v21  ;;  %v3597_v20 = vld [vmem:[#allocation6 + $0xd4] ss:$8 sps:$4 sm:$0xff]   ;;  %v3933_v21 = vld [vmem:[%s3980_s7] ss:$4 sm:$0xf] }
 0x12c   :  { %1978 = vmatprep.subr.bf16.mxu0 %v3462_v22  ;;  %2269 = vmatprep.subr.bf16.mxu1 %v3558_v57  ;;  %v3936_v22 = vsub.s32 1, %v3906_v43  ;;  %v3526_v57 = vld [vmem:[#allocation4 + $0x160] ss:$8 sps:$4 sm:$0xff]  }
 0x12e   :  { %1442 = vmatmul.mubr.bf16.vlgmr.msra.gmra.mrb[0].mxu0 %v151_v24  ;;  %1565 = vmatmul.mubr.bf16.vlgmr.msra.gmra.mrb[0].mxu1 %v151_v24  ;;  %v361_v24 = vsub.s32 3, %v3906_v43 }
 0x12f   :  { %1979 = vmatpush1.bf16.msra.mxu0 %v3460_v25  ;;  %2270 = vmatpush1.bf16.msra.mxu1 %v3556_v56  ;;  %v3595_v25 = vld [vmem:[#allocation6 + $0xd0] ss:$8 sps:$4 sm:$0xff]   ;;  %v3528_v56 = vld [vmem:[#allocation4 + $0x164] ss:$8 sps:$4 sm:$0xff]  }
 0x130   :  { %1980 = vmatprep.subr.bf16.mxu0 %v3465_v26  ;;  %2271 = vmatprep.subr.bf16.mxu1 %v3561_v58  ;;  %v350_v26 = vrot.slane %v3933_v21, %v3928_v19  ;;  %v3531_v58 = vld [vmem:[#allocation4 + $0x174] ss:$8 sps:$4 sm:$0xff]  }
 0x133   :  { %1981 = vmatpush1.bf16.msra.mxu0 %v3463_v27  ;;  %2272 = vmatpush1.bf16.msra.mxu1 %v3559_v59  ;;  %v354_v27 = vrot.slane %v3933_v21, %v3936_v22  ;;  %v3529_v59 = vld [vmem:[#allocation4 + $0x170] ss:$8 sps:$4 sm:$0xff]  }
 0x134   :  { %1982 = vmatprep.subr.bf16.mxu0 %v3468_v9  ;;  %2273 = vmatprep.subr.bf16.mxu1 %v3564_v60  ;;  %v362_v9 = vrot.slane %v3933_v21, %v361_v24  ;;  %v3534_v60 = vld [vmem:[#allocation4 + $0x184] ss:$8 sps:$4 sm:$0xff]  }
 0x135   :  { %v2326_v24 = vld [vmem:[#allocation9 + $0x80] sm:$0xff] }
 0x137   :  { %1983 = vmatpush1.bf16.msra.mxu0 %v3466_v28  ;;  %2274 = vmatpush1.bf16.msra.mxu1 %v3562_v61  ;;  %v3532_v61 = vld [vmem:[#allocation4 + $0x180] ss:$8 sps:$4 sm:$0xff]  }
 0x138   :  { %1984 = vmatprep.subr.bf16.mxu0 %v3471_v29  ;;  %2275 = vmatprep.subr.bf16.mxu1 %v3567_v62  ;;  %v3537_v62 = vld [vmem:[#allocation4 + $0x194] ss:$8 sps:$4 sm:$0xff]  }
 0x13b   :  { %1985 = vmatpush1.bf16.msra.mxu0 %v3469_v30  ;;  %2276 = vmatpush1.bf16.msra.mxu1 %v3565_v63  ;;  %v3535_v63 = vld [vmem:[#allocation4 + $0x190] ss:$8 sps:$4 sm:$0xff]  }
 0x13c   :  { %1986 = vmatprep.subr.bf16.mxu0 %v3474_v31  ;;  %2277 = vmatprep.subr.bf16.mxu1 %v3570_v0  ;;  %v3540_v0 = vld [vmem:[#allocation4 + $0x1a4] ss:$8 sps:$4 sm:$0xff]  }
 0x13f   :  { %1987 = vmatpush1.bf16.msra.mxu0 %v3472_v23  ;;  %2278 = vmatpush1.bf16.msra.mxu1 %v3568_v1  ;;  %v3538_v1 = vld [vmem:[#allocation4 + $0x1a0] ss:$8 sps:$4 sm:$0xff]  }
 0x140   :  { %1988 = vmatprep.subr.bf16.mxu0 %v3477_v32  ;;  %2279 = vmatprep.subr.bf16.mxu1 %v3573_v2  ;;  %v3543_v2 = vld [vmem:[#allocation4 + $0x1b4] ss:$8 sps:$4 sm:$0xff]  }
 0x143   :  { %1989 = vmatpush1.bf16.msra.mxu0 %v3475_v33  ;;  %2280 = vmatpush1.bf16.msra.mxu1 %v3571_v3  ;;  %v3541_v3 = vld [vmem:[#allocation4 + $0x1b0] ss:$8 sps:$4 sm:$0xff]  }
 0x144   :  { %1990 = vmatprep.subr.bf16.mxu0 %v3480_v34  ;;  %2281 = vmatprep.subr.bf16.mxu1 %v3576_v4  ;;  %v3546_v4 = vld [vmem:[#allocation4 + $0x1c4] ss:$8 sps:$4 sm:$0xff]  }
 0x147   :  { %1991 = vmatpush1.bf16.msra.mxu0 %v3478_v35  ;;  %2282 = vmatpush1.bf16.msra.mxu1 %v3574_v5  ;;  %v3544_v5 = vld [vmem:[#allocation4 + $0x1c0] ss:$8 sps:$4 sm:$0xff]  }
 0x148   :  { %1992 = vmatprep.subr.bf16.mxu0 %v3483_v36  ;;  %2283 = vmatprep.subr.bf16.mxu1 %v3579_v6  ;;  %v357_v6 = vsub.s32 2, %v3906_v43 }
 0x14b   :  { %1993 = vmatpush1.bf16.msra.mxu0 %v3481_v37  ;;  %2284 = vmatpush1.bf16.msra.mxu1 %v3577_v7  ;;  %v3549_v7 = vld [vmem:[#allocation4 + $0x1d4] ss:$8 sps:$4 sm:$0xff]  }
 0x14c   :  { %1994 = vmatprep.subr.bf16.mxu0 %v3486_v38  ;;  %2285 = vmatprep.subr.bf16.mxu1 %v3582_v8  ;;  %v3547_v8 = vld [vmem:[#allocation4 + $0x1d0] ss:$8 sps:$4 sm:$0xff]  }
 0x14f   :  { %1995 = vmatpush1.bf16.msra.mxu0 %v3484_v39  ;;  %2286 = vmatpush1.bf16.msra.mxu1 %v3580_v10  ;;  %v358_v10 = vrot.slane %v3933_v21, %v357_v6  ;;  %v3601_v21 = vld [vmem:[#allocation6 + $0xf0] ss:$8 sps:$4 sm:$0xff]  }
 0x150   :  { %1996 = vmatprep.subr.bf16.mxu0 %v3489_v40  ;;  %2287 = vmatprep.subr.bf16.mxu1 %v3585_v11  ;;  %v3552_v11 = vld [vmem:[#allocation4 + $0x1e4] ss:$8 sps:$4 sm:$0xff]   ;;  %v2321_v6 = vld [vmem:[#allocation9 + $0x58] sm:$0xff] }
 0x153   :  { %1997 = vmatpush1.bf16.msra.mxu0 %v3487_v41  ;;  %2288 = vmatpush1.bf16.msra.mxu1 %v3583_v12  ;;  %v3550_v12 = vld [vmem:[#allocation4 + $0x1e0] ss:$8 sps:$4 sm:$0xff]  }
 0x154   :  { %1998 = vmatprep.subr.bf16.mxu0 %v3492_v42  ;;  %2289 = vmatprep.subr.bf16.mxu1 %v3588_v13  ;;  %v3508_v42 = vld [vmem:[#allocation4 + $0x100] ss:$8 sps:$4 sm:$0xff]  }
 0x157   :  { %1999 = vmatpush1.bf16.msra.mxu0 %v3490_v44  ;;  %2290 = vmatpush1.bf16.msra.mxu1 %v3586_v14  ;;  %v3555_v14 = vld [vmem:[#allocation4 + $0x1f4] ss:$8 sps:$4 sm:$0xff]  }
 0x158   :  { %2000 = vmatprep.subr.bf16.mxu0 %v3495_v45  ;;  %2291 = vmatprep.subr.bf16.mxu1 %v3591_v15  ;;  %v3513_v45 = vld [vmem:[#allocation4 + $0x114] ss:$8 sps:$4 sm:$0xff]   ;;  %v3553_v15 = vld [vmem:[#allocation4 + $0x1f0] ss:$8 sps:$4 sm:$0xff]  }
 0x15b   :  { %2001 = vmatpush1.bf16.msra.mxu0 %v3493_v46  ;;  %2292 = vmatpush1.bf16.msra.mxu1 %v3589_v16 }
 0x15c   :  { %2002 = vmatprep.subr.bf16.mxu0 %v3498_v47  ;;  %2293 = vmatprep.subr.bf16.mxu1 %v3594_v17  ;;  %v3511_v47 = vld [vmem:[#allocation4 + $0x110] ss:$8 sps:$4 sm:$0xff]   ;;  %v3600_v17 = vld [vmem:[#allocation6 + $0xe4] ss:$8 sps:$4 sm:$0xff]  }
 0x15f   :  { %2003 = vmatpush1.bf16.msra.mxu0 %v3496_v48  ;;  %2294 = vmatpush1.bf16.msra.mxu1 %v3592_v18  ;;  %v3516_v48 = vld [vmem:[#allocation4 + $0x124] ss:$8 sps:$4 sm:$0xff]   ;;  %v3598_v18 = vld [vmem:[#allocation6 + $0xe0] ss:$8 sps:$4 sm:$0xff]  }
 0x160   :  { %2004 = vmatprep.subr.bf16.mxu0 %v3501_v49  ;;  %2295 = vmatprep.subr.bf16.mxu1 %v3597_v20  ;;  %v3514_v49 = vld [vmem:[#allocation4 + $0x120] ss:$8 sps:$4 sm:$0xff]   ;;  %v3603_v20 = vld [vmem:[#allocation6 + $0xf4] ss:$8 sps:$4 sm:$0xff]  }
 0x163   :  { %2005 = vmatpush1.bf16.msra.mxu0 %v3499_v50  ;;  %2296 = vmatpush1.bf16.msra.mxu1 %v3595_v25  ;;  %v3519_v50 = vld [vmem:[#allocation4 + $0x134] ss:$8 sps:$4 sm:$0xff]   ;;  %v2327_v25 = vld [vmem:[#allocation9 + $0x88] sm:$0xff] }
 0x164   :  { %2006 = vmatprep.subr.bf16.mxu0 %v3504_v51  ;;  %v3517_v51 = vld [vmem:[#allocation4 + $0x130] ss:$8 sps:$4 sm:$0xff]   ;;  %2297 = vmatprep.subr.bf16.mxu1 %v3600_v17 }
 0x165   :  { %v2324_v17 = vld [vmem:[#allocation9 + $0x70] sm:$0xff] }
 0x167   :  { %2007 = vmatpush1.bf16.msra.mxu0 %v3502_v52  ;;  %v3522_v52 = vld [vmem:[#allocation4 + $0x144] ss:$8 sps:$4 sm:$0xff]   ;;  %2298 = vmatpush1.bf16.msra.mxu1 %v3598_v18  ;;  %v2325_v18 = vld [vmem:[#allocation9 + $0x78] sm:$0xff] }
 0x168   :  { %2008 = vmatprep.subr.bf16.mxu0 %v3507_v53  ;;  %v3520_v53 = vld [vmem:[#allocation4 + $0x140] ss:$8 sps:$4 sm:$0xff]   ;;  %2299 = vmatprep.subr.bf16.mxu1 %v3603_v20  ;;  %v3097_v20 = vpack.c.bf16 %v2325_v18, %v2324_v17  ;;  %v3608_v18 = vld [vmem:[#allocation7 + $0x50] sm:$0xff]  }
 0x169   :  { %v3607_v17 = vld [vmem:[#allocation7 + $0x8] sm:$0xff]  }
 0x16b   :  { %2009 = vmatpush1.bf16.msra.mxu0 %v3505_v54  ;;  %v3525_v54 = vld [vmem:[#allocation4 + $0x154] ss:$8 sps:$4 sm:$0xff]   ;;  %2300 = vmatpush1.bf16.msra.mxu1 %v3601_v21  ;;  %v2413_v21 = vld [vmem:[#allocation10 + $0x8] sm:$0xff] }
 0x16c   :  { %2019 = vmatprep.subr.bf16.mxu0 %v3510_v55  ;;  %v3523_v55 = vld [vmem:[#allocation4 + $0x150] ss:$8 sps:$4 sm:$0xff]  }
 0x201   :  { %v1443_v28 = vpop.f32.mrb[0].mxu0  ;;  %v3944_v29 = vpop.f32.mrb[0].mxu1 }
 0x202   :  { %v3131_v30 = vadd.f32 %v1443_v28, %v350_v26  ;;  %v1445_v31 = vpop.f32.mrb[1].mxu0  ;;  %v1568_v23 = vpop.f32.mrb[1].mxu1  ;;  %v3133_v13 = vadd.f32 %v3944_v29, %v358_v10  ;;  %v3067_v26 = vpack.c.bf16 %v2327_v25, %v2326_v24  ;;  %v2415_v24 = vld [vmem:[#allocation10 + $0x18] sm:$0xff] }
 0x203   :  { %v3132_v32 = vadd.f32 %v1445_v31, %v354_v27  ;;  %v3134_v33 = vadd.f32 %v1568_v23, %v362_v9  ;;  %v1447_v34 = vpop.f32.mrb[2].mxu0  ;;  %v1570_v35 = vpop.f32.mrb[2].mxu1  ;;  %v2895_v27 = vld [vmem:[%s3980_s7 + $0x1] ss:$4 sm:$0x3]  ;;  %v3099_v25 = vpack.c.bf16 %v2415_v24, %v2413_v21  ;;  %v3610_v21 = vld [vmem:[#allocation7 + $0x58] sm:$0xff]  }
 0x204   :  { %v1573_v36 = vmax.f32 %v3131_v30, 0.0  ;;  %v1448_v37 = vpop.f32.mrb[3].mxu0  ;;  %v1571_v38 = vpop.f32.mrb[3].mxu1  ;;  %v1575_v16 = vmax.f32 %v3133_v13, 0.0  ;;  %3068 = vmatprep.subr.bf16.mxu1 %v3067_v26  ;;  %v1651_v9 = vrot.slane %v2895_v27, %v3928_v19  ;;  %v1655_v28 = vrot.slane %v2895_v27, %v3936_v22  ;;  %v2310_v35 = vld [vmem:[#allocation9] sm:$0xff]  ;;  %v2323_v13 = vld [vmem:[#allocation9 + $0x68] sm:$0xff] }
 0x205   :  { %v1574_v39 = vmax.f32 %v3132_v32, 0.0  ;;  %v1576_v40 = vmax.f32 %v3134_v33, 0.0  ;;  %v2328_v38 = vld [vmem:[#allocation9 + $0x90] sm:$0xff]  ;;  %v2960_v26 = vld [vmem:[%s3980_s7 + $0x2] ss:$4 sm:$0x3] }
 0x206   :  { %v1577_v44 = vpack.c.bf16 %v1573_v36, %v1573_v36  ;;  %v1579_v43 = vpack.c.bf16 %v1575_v16, %v1575_v16  ;;  %v2311_v36 = vld [vmem:[#allocation9 + $0x8] sm:$0xff]  ;;  %v2341_v16 = vld [vmem:[#allocation9 + $0xf8] sm:$0xff]  ;;  %v2106_v27 = vrot.slane %v2960_v26, %v3936_v22 }
 0x207   :  { %v1578_v41 = vpack.c.bf16 %v1574_v39, %v1574_v39  ;;  %v1580_v46 = vpack.c.bf16 %v1576_v40, %v1576_v40  ;;  %v2329_v39 = vld [vmem:[#allocation9 + $0x98] sm:$0xff]  ;;  %v2421_v22 = vld [vmem:[#allocation10 + $0x48] sm:$0xff] }
 0x208   :  { %v3611_v24 = vld [vmem:[#allocation7 + $0x18] sm:$0xff]  }
 0x209   :  { %2010 = vmatprep.mubr.bf16.mxu0 %v1578_v41  ;;  %v3069_v41 = vpack.c.bf16 %v2311_v36, %v2310_v35 }
 0x20a   :  { %2011 = vmatmul.mubr.bf16.vlgmr.msra.gmra.mrb[4].mxu0 %v1577_v44  ;;  %v3071_v44 = vpack.c.bf16 %v2329_v39, %v2328_v38  ;;  %v2416_v39 = vld [vmem:[#allocation10 + $0x20] sm:$0xff] }
 0x20b   :  { %2020 = vmatpush1.bf16.msra.mxu0 %v3508_v42  ;;  %2051 = vmatprep.mubr.bf16.mxu0 %v1580_v46  ;;  %v2313_v46 = vld [vmem:[#allocation9 + $0x18] sm:$0xff] }
 0x20c   :  { %2021 = vmatprep.subr.bf16.mxu0 %v3513_v45  ;;  %v2312_v45 = vld [vmem:[#allocation9 + $0x10] sm:$0xff] }
 0x20f   :  { %2022 = vmatpush1.bf16.msra.mxu0 %v3511_v47  ;;  %v2330_v47 = vld [vmem:[#allocation9 + $0xa0] sm:$0xff] }
 0x210   :  { %2023 = vmatprep.subr.bf16.mxu0 %v3516_v48  ;;  %v2331_v48 = vld [vmem:[#allocation9 + $0xa8] sm:$0xff] }
 0x213   :  { %2024 = vmatpush1.bf16.msra.mxu0 %v3514_v49  ;;  %v3073_v49 = vpack.c.bf16 %v2313_v46, %v2312_v45  ;;  %v2422_v45 = vld [vmem:[#allocation10 + $0x50] sm:$0xff]  ;;  %v2425_v46 = vld [vmem:[#allocation10 + $0x68] sm:$0xff] }
 0x214   :  { %2025 = vmatprep.subr.bf16.mxu0 %v3519_v50  ;;  %v3075_v50 = vpack.c.bf16 %v2331_v48, %v2330_v47  ;;  %v2427_v47 = vld [vmem:[#allocation10 + $0x78] sm:$0xff] }
 0x217   :  { %2026 = vmatpush1.bf16.msra.mxu0 %v3517_v51  ;;  %v2314_v51 = vld [vmem:[#allocation9 + $0x20] sm:$0xff] }
 0x218   :  { %2027 = vmatprep.subr.bf16.mxu0 %v3522_v52  ;;  %v2315_v52 = vld [vmem:[#allocation9 + $0x28] sm:$0xff] }
 0x21b   :  { %2028 = vmatpush1.bf16.msra.mxu0 %v3520_v53  ;;  %v2332_v53 = vld [vmem:[#allocation9 + $0xb0] sm:$0xff] }
 0x21c   :  { %2029 = vmatprep.subr.bf16.mxu0 %v3525_v54  ;;  %v2333_v54 = vld [vmem:[#allocation9 + $0xb8] sm:$0xff] }
 0x21f   :  { %2030 = vmatpush1.bf16.msra.mxu0 %v3523_v55  ;;  %v3077_v55 = vpack.c.bf16 %v2315_v52, %v2314_v51  ;;  %v2426_v51 = vld [vmem:[#allocation10 + $0x70] sm:$0xff]  ;;  %v2429_v52 = vld [vmem:[#allocation10 + $0x88] sm:$0xff] }
 0x220   :  { %2031 = vmatprep.subr.bf16.mxu0 %v3528_v56  ;;  %v3079_v56 = vpack.c.bf16 %v2333_v54, %v2332_v53  ;;  %v2431_v53 = vld [vmem:[#allocation10 + $0x98] sm:$0xff] }
 0x223   :  { %2032 = vmatpush1.bf16.msra.mxu0 %v3526_v57  ;;  %v2316_v57 = vld [vmem:[#allocation9 + $0x30] sm:$0xff] }
 0x224   :  { %2033 = vmatprep.subr.bf16.mxu0 %v3531_v58  ;;  %v2317_v58 = vld [vmem:[#allocation9 + $0x38] sm:$0xff] }
 0x227   :  { %2034 = vmatpush1.bf16.msra.mxu0 %v3529_v59  ;;  %v2334_v59 = vld [vmem:[#allocation9 + $0xc0] sm:$0xff] }
 0x228   :  { %2035 = vmatprep.subr.bf16.mxu0 %v3534_v60  ;;  %v2335_v60 = vld [vmem:[#allocation9 + $0xc8] sm:$0xff] }
 0x22b   :  { %2036 = vmatpush1.bf16.msra.mxu0 %v3532_v61  ;;  %v3081_v61 = vpack.c.bf16 %v2317_v58, %v2316_v57  ;;  %v2430_v57 = vld [vmem:[#allocation10 + $0x90] sm:$0xff]  ;;  %v2433_v58 = vld [vmem:[#allocation10 + $0xa8] sm:$0xff] }
 0x22c   :  { %2037 = vmatprep.subr.bf16.mxu0 %v3537_v62  ;;  %v3083_v62 = vpack.c.bf16 %v2335_v60, %v2334_v59  ;;  %v2435_v59 = vld [vmem:[#allocation10 + $0xb8] sm:$0xff] }
 0x22f   :  { %2038 = vmatpush1.bf16.msra.mxu0 %v3535_v63  ;;  %v2318_v63 = vld [vmem:[#allocation9 + $0x40] sm:$0xff] }
 0x230   :  { %2039 = vmatprep.subr.bf16.mxu0 %v3540_v0  ;;  %v2319_v0 = vld [vmem:[#allocation9 + $0x48] sm:$0xff] }
 0x233   :  { %2040 = vmatpush1.bf16.msra.mxu0 %v3538_v1  ;;  %v2336_v1 = vld [vmem:[#allocation9 + $0xd0] sm:$0xff] }
 0x234   :  { %2041 = vmatprep.subr.bf16.mxu0 %v3543_v2  ;;  %v2337_v2 = vld [vmem:[#allocation9 + $0xd8] sm:$0xff] }
 0x237   :  { %2042 = vmatpush1.bf16.msra.mxu0 %v3541_v3  ;;  %v3085_v3 = vpack.c.bf16 %v2319_v0, %v2318_v63  ;;  %v2434_v63 = vld [vmem:[#allocation10 + $0xb0] sm:$0xff]  ;;  %v2437_v0 = vld [vmem:[#allocation10 + $0xc8] sm:$0xff] }
 0x238   :  { %2043 = vmatprep.subr.bf16.mxu0 %v3546_v4  ;;  %v3087_v4 = vpack.c.bf16 %v2337_v2, %v2336_v1  ;;  %v2439_v1 = vld [vmem:[#allocation10 + $0xd8] sm:$0xff] }
 0x23b   :  { %2044 = vmatpush1.bf16.msra.mxu0 %v3544_v5  ;;  %v2320_v5 = vld [vmem:[#allocation9 + $0x50] sm:$0xff] }
 0x23c   :  { %2045 = vmatprep.subr.bf16.mxu0 %v3549_v7  ;;  %v2338_v7 = vld [vmem:[#allocation9 + $0xe0] sm:$0xff]  ;;  %v3089_v10 = vpack.c.bf16 %v2321_v6, %v2320_v5  ;;  %v2438_v5 = vld [vmem:[#allocation10 + $0xd0] sm:$0xff] }
 0x23f   :  { %2046 = vmatpush1.bf16.msra.mxu0 %v3547_v8  ;;  %v2339_v8 = vld [vmem:[#allocation9 + $0xe8] sm:$0xff] }
 0x240   :  { %2047 = vmatprep.subr.bf16.mxu0 %v3552_v11  ;;  %v3091_v11 = vpack.c.bf16 %v2339_v8, %v2338_v7  ;;  %v2441_v7 = vld [vmem:[#allocation10 + $0xe8] sm:$0xff]  ;;  %v2443_v8 = vld [vmem:[#allocation10 + $0xf8] sm:$0xff] }
 0x243   :  { %2048 = vmatpush1.bf16.msra.mxu0 %v3550_v12  ;;  %v2322_v12 = vld [vmem:[#allocation9 + $0x60] sm:$0xff] }
 0x244   :  { %2049 = vmatprep.subr.bf16.mxu0 %v3555_v14  ;;  %v3093_v14 = vpack.c.bf16 %v2323_v13, %v2322_v12  ;;  %v2442_v12 = vld [vmem:[#allocation10 + $0xf0] sm:$0xff] }
 0x247   :  { %2050 = vmatpush1.bf16.msra.mxu0 %v3553_v15  ;;  %v2340_v15 = vld [vmem:[#allocation9 + $0xf0] sm:$0xff] }
 0x24a   :  { %2052 = vmatmul.mubr.bf16.vlgmr.msra.gmra.mrb[4].mxu0 %v1579_v43  ;;  %v3095_v43 = vpack.c.bf16 %v2341_v16, %v2340_v15  ;;  %v3604_v15 = vld [vmem:[#allocation7 + $0x40] sm:$0xff]  }
 0x24b   :  { %v3605_v16 = vld [vmem:[#allocation7] sm:$0xff]   ;;  %3045 = vmatprep.subr.bf16.mxu0 %v3604_v15 }
 0x24c   :  { %3046 = vmatpush3.bf16.msra.mxu0 %v3605_v16 }
 0x31d   :  { %v2053_v29 = vpop.f32.mrb[4].mxu0 }
 0x31e   :  { %v3135_v30 = vadd.f32 %v2053_v29, %v1651_v9  ;;  %v2055_v31 = vpop.f32.mrb[5].mxu0  ;;  %v2102_v9 = vrot.slane %v2960_v26, %v3928_v19  ;;  %v2414_v29 = vld [vmem:[#allocation10 + $0x10] sm:$0xff]  ;;  %v2423_v19 = vld [vmem:[#allocation10 + $0x58] sm:$0xff]  ;;  %v3613_v26 = vld [vmem:[#allocation7 + $0x20] sm:$0xff]  }
 0x31f   :  { %v3136_v23 = vadd.f32 %v2055_v31, %v1655_v28  ;;  %v2057_v32 = vpop.f32.mrb[6].mxu0  ;;  %v2412_v28 = vld [vmem:[#allocation10] sm:$0xff]  ;;  %v2417_v31 = vld [vmem:[#allocation10 + $0x28] sm:$0xff] }
 0x320   :  { %v2060_v33 = vmax.f32 %v3135_v30, 0.0  ;;  %v2058_v34 = vpop.f32.mrb[7].mxu0  ;;  %v3101_v35 = vpack.c.bf16 %v2414_v29, %v2412_v28  ;;  %v3616_v28 = vld [vmem:[#allocation7 + $0x70] sm:$0xff]  }
 0x321   :  { %v2061_v37 = vmax.f32 %v3136_v23, 0.0  ;;  %v2419_v23 = vld [vmem:[#allocation10 + $0x38] sm:$0xff] }
 0x322   :  { %v2062_v42 = vpack.c.bf16 %v2060_v33, %v2060_v33  ;;  %v3103_v38 = vpack.c.bf16 %v2419_v23, %v2417_v31  ;;  %v3617_v23 = vld [vmem:[#allocation7 + $0x30] sm:$0xff]  }
 0x323   :  { %v2063_v40 = vpack.c.bf16 %v2061_v37, %v2061_v37 }
 0x325   :  { %2301 = vmatprep.mubr.bf16.mxu1 %v2063_v40  ;;  %v2418_v40 = vld [vmem:[#allocation10 + $0x30] sm:$0xff] }
 0x326   :  { %2302 = vmatmul.mubr.bf16.vlgmr.msra.gmra.mrb[4].mxu1 %v2062_v42  ;;  %v3107_v42 = vpack.c.bf16 %v2423_v19, %v2421_v22 }
 0x327   :  { %3070 = vmatpush3.bf16.msra.mxu1 %v3069_v41  ;;  %v3105_v41 = vpack.c.bf16 %v2418_v40, %v2416_v39 }
 0x328   :  { %3072 = vmatprep.subr.bf16.mxu1 %v3071_v44  ;;  %v2420_v44 = vld [vmem:[#allocation10 + $0x40] sm:$0xff] }
 0x329   :  { %v3109_v48 = vpack.c.bf16 %v2422_v45, %v2420_v44 }
 0x32b   :  { %3074 = vmatpush3.bf16.msra.mxu1 %v3073_v49  ;;  %v3111_v49 = vpack.c.bf16 %v2427_v47, %v2425_v46 }
 0x32c   :  { %3076 = vmatprep.subr.bf16.mxu1 %v3075_v50  ;;  %v2424_v50 = vld [vmem:[#allocation10 + $0x60] sm:$0xff] }
 0x32d   :  { %v3113_v54 = vpack.c.bf16 %v2426_v51, %v2424_v50 }
 0x32f   :  { %3078 = vmatpush3.bf16.msra.mxu1 %v3077_v55  ;;  %v3115_v55 = vpack.c.bf16 %v2431_v53, %v2429_v52 }
 0x330   :  { %3080 = vmatprep.subr.bf16.mxu1 %v3079_v56  ;;  %v2428_v56 = vld [vmem:[#allocation10 + $0x80] sm:$0xff] }
 0x331   :  { %v3117_v60 = vpack.c.bf16 %v2430_v57, %v2428_v56 }
 0x333   :  { %3082 = vmatpush3.bf16.msra.mxu1 %v3081_v61  ;;  %v3119_v61 = vpack.c.bf16 %v2435_v59, %v2433_v58 }
 0x334   :  { %3084 = vmatprep.subr.bf16.mxu1 %v3083_v62  ;;  %v2432_v62 = vld [vmem:[#allocation10 + $0xa0] sm:$0xff] }
 0x335   :  { %v3121_v2 = vpack.c.bf16 %v2434_v63, %v2432_v62 }
 0x337   :  { %3086 = vmatpush3.bf16.msra.mxu1 %v3085_v3  ;;  %v3123_v3 = vpack.c.bf16 %v2439_v1, %v2437_v0 }
 0x338   :  { %3088 = vmatprep.subr.bf16.mxu1 %v3087_v4  ;;  %v2436_v4 = vld [vmem:[#allocation10 + $0xc0] sm:$0xff] }
 0x339   :  { %v3125_v6 = vpack.c.bf16 %v2438_v5, %v2436_v4 }
 0x33b   :  { %3090 = vmatpush3.bf16.msra.mxu1 %v3089_v10  ;;  %v3127_v10 = vpack.c.bf16 %v2443_v8, %v2441_v7 }
 0x33c   :  { %3092 = vmatprep.subr.bf16.mxu1 %v3091_v11  ;;  %v2440_v11 = vld [vmem:[#allocation10 + $0xe0] sm:$0xff] }
 0x33d   :  { %v3129_v13 = vpack.c.bf16 %v2442_v12, %v2440_v11 }
 0x33f   :  { %3094 = vmatpush3.bf16.msra.mxu1 %v3093_v14  ;;  %v3773_v14 = vmov 0.0  }
 0x340   :  { %3096 = vmatprep.subr.bf16.mxu1 %v3095_v43  ;;  %v3606_v43 = vld [vmem:[#allocation7 + $0x48] sm:$0xff]  }
 0x341   :  { %3047 = vmatprep.subr.bf16.mxu0 %v3606_v43 }
 0x342   :  { %3048 = vmatpush3.bf16.msra.mxu0 %v3607_v17 }
 0x343   :  { %3098 = vmatpush3.bf16.msra.mxu1 %v3097_v20  ;;  %v3609_v20 = vld [vmem:[#allocation7 + $0x10] sm:$0xff]   ;;  %3049 = vmatprep.subr.bf16.mxu0 %v3608_v18 }
 0x344   :  { %3100 = vmatprep.subr.bf16.mxu1 %v3099_v25  ;;  %v3612_v25 = vld [vmem:[#allocation7 + $0x60] sm:$0xff]  }
 0x346   :  { %3050 = vmatpush3.bf16.msra.mxu0 %v3609_v20 }
 0x347   :  { %3051 = vmatprep.subr.bf16.mxu0 %v3610_v21 }
 0x34a   :  { %3052 = vmatpush3.bf16.msra.mxu0 %v3611_v24 }
 0x34b   :  { %3053 = vmatprep.subr.bf16.mxu0 %v3612_v25 }
 0x34e   :  { %3054 = vmatpush3.bf16.msra.mxu0 %v3613_v26 }
 0x3f9   :  { %v2303_v30 = vpop.f32.mrb[4].mxu1 }
 0x3fa   :  { %v2305_v32 = vpop.f32.mrb[5].mxu1  ;;  %v3961_v36 = vadd.f32 %v2303_v30, %v2102_v9  ;;  %v3615_v9 = vld [vmem:[#allocation7 + $0x28] sm:$0xff]  }
 0x3fb   :  { %v3959_v33 = vadd.f32 %v2305_v32, %v2106_v27  ;;  %v2307_v34 = vpop.f32.mrb[6].mxu1  ;;  %v3614_v27 = vld [vmem:[#allocation7 + $0x68] sm:$0xff]   ;;  %v3618_v32 = vld [vmem:[#allocation7 + $0x78] sm:$0xff]  }
 0x3fc   :  { %v2308_v37 = vpop.f32.mrb[7].mxu1  ;;  %3055 = vmatprep.subr.bf16.mxu0 %v3614_v27  ;;  %v3619_v34 = vld [vmem:[#allocation7 + $0x38] sm:$0xff]  }
 0x3fd   :  { %2406 = vmatprep.mubr.f32.mxu1 %v3959_v33  ;;  %3056 = vmatpush3.bf16.msra.mxu0 %v3615_v9 }
 0x3fe   :  { %2407 = vmatmul.mubr.f32.vlgmr.msra.gmra.mrb[8].mxu1 %v3961_v36  ;;  %3057 = vmatprep.subr.bf16.mxu0 %v3616_v28 }
 0x3ff   :  { %3102 = vmatpush1.bf16.msra.mxu1 %v3101_v35  ;;  %2508 = vmatprep.mubr.f32.mxu1 %v3773_v14 }
 0x400   :  { %3104 = vmatprep.subr.bf16.mxu1 %v3103_v38 }
 0x401   :  { %3058 = vmatpush3.bf16.msra.mxu0 %v3617_v23 }
 0x402   :  { %3059 = vmatprep.subr.bf16.mxu0 %v3618_v32 }
 0x403   :  { %3106 = vmatpush1.bf16.msra.mxu1 %v3105_v41  ;;  %v2993_v41 = vld [vmem:[%s3980_s7 + $0x3] ss:$0 sm:$0xff] }
 0x404   :  { %3108 = vmatprep.subr.bf16.mxu1 %v3107_v42 }
 0x405   :  { %3060 = vmatpush3.bf16.msra.mxu0 %v3619_v34 }
 0x407   :  { %3110 = vmatpush1.bf16.msra.mxu1 %v3109_v48 }
 0x408   :  { %3112 = vmatprep.subr.bf16.mxu1 %v3111_v49 }
 0x40b   :  { %3114 = vmatpush1.bf16.msra.mxu1 %v3113_v54 }
 0x40c   :  { %3116 = vmatprep.subr.bf16.mxu1 %v3115_v55 }
 0x40f   :  { %3118 = vmatpush1.bf16.msra.mxu1 %v3117_v60 }
 0x410   :  { %3120 = vmatprep.subr.bf16.mxu1 %v3119_v61 }
 0x413   :  { %3122 = vmatpush1.bf16.msra.mxu1 %v3121_v2 }
 0x414   :  { %3124 = vmatprep.subr.bf16.mxu1 %v3123_v3 }
 0x417   :  { %3126 = vmatpush1.bf16.msra.mxu1 %v3125_v6 }
 0x418   :  { %3128 = vmatprep.subr.bf16.mxu1 %v3127_v10 }
 0x41b   :  { %3130 = vmatpush1.bf16.msra.mxu1 %v3129_v13 }
 0x4d1   :  { %v3042_v29 = vpop.f32.mrb[8].mxu1 }
 0x4d2   :  { %v3043_v30 = vpop.f32.mrb[9].mxu1 }
 0x4d3   :  { %v3044_v31 = vadd.f32 %v3043_v30, %v3042_v29 }
 0x4d5   :  { %2509 = vmatmul.mubr.f32.vlgmr.msra.gmra.mrb[10].mxu1 %v3044_v31 }
 0x5a8   :  { %v2510_v35 = vpop.f32.mrb[10].mxu1 }
 0x5a9   :  { %v2515_v37 = vmul.f32 %v2510_v35, %v3961_v36  ;;  %v2512_v38 = vpop.f32.mrb[11].mxu1 }
 0x5aa   :  { %v2516_v39 = vmul.f32 %v2512_v38, %v3959_v33 }
 0x5ab   :  { %v2517_v22 = vpack.c.bf16 %v2515_v37, %v2515_v37 }
 0x5ac   :  { %v2518_v40 = vpack.c.bf16 %v2516_v39, %v2516_v39 }
 0x5ae   :  { %2684 = vmatprep.mubr.bf16.mxu0 %v2518_v40 }
 0x5af   :  { %2685 = vmatmul.mubr.bf16.vlgmr.msra.gmra.mrb[8].mxu0 %v2517_v22 }
 0x682   :  { %v3061_v19 = vpop.f32.mrb[8].mxu0 }
 0x683   :  { %v3062_v42 = vpop.f32.mrb[9].mxu0 }
 0x684   :  { %v3063_v44 = vadd.f32 %v3062_v42, %v3061_v19  ;;  %v3064_v45 = vpop.f32.mrb[10].mxu0 }
 0x685   :  { %v3065_v46 = vpop.f32.mrb[11].mxu0 }
 0x686   :  { %v2687_v47 = vadd.f32 %v3063_v44, %v2993_v41 }
 0x688   :  { %v2692_v48 = vadd.f32 %v3044_v31, %v2687_v47 }
 0x68a   :  { %2693 = vst [vmem:[%s3981_s8] sm:$0x3] %v2692_v48 }
 0x68b   :  { %2698 = vsyncpa [#allocation3], 1 }
 0x68c   :  { %2699 = vsyncpa [#allocation5], 1 }
 0x68d   :  { %2700 = vsyncpa [#allocation8], 1 }
 0x68e   :  { %2701 = vsyncpa [#allocation11], 1 }

</bundles_post_ra>
